<compile_context>
chip_gen: v7x
topology: tpu7x:2x2x1
jax: 0.10.0
libtpu: 0.0.40
codegen_flags: <defaults>
</compile_context>

<pallas_src>
import numpy as np
import jax
import jax.numpy as jnp
from jax.experimental import pallas as pl
from jax.experimental.pallas import tpu as pltpu


_VMEM_LIMIT = 48 * 1024 * 1024   # raise scoped-VMEM default (16/32 MiB); < 64 MiB v7x physical
_FWD_ROW_TILE = 128              # output-row tile, forward fused resize (384/512 % 128 == 0)
_BWD_ROW_TILE = 256              # output-row tile, back resize (keeps per-step VMEM small)


def _round_up(x, m):
    return ((x + m - 1) // m) * m


# ---------------------------------------------------------------------------
# Bicubic interpolation matrices (exact PyTorch upsample_bicubic2d semantics,
# align_corners=False, cubic coefficient A = -0.75, edge-index clamping).
# ---------------------------------------------------------------------------
def bicubic_matrix(out_size: int, in_size: int, A: float = -0.75) -> np.ndarray:
    def cc1(x):  # |x| <= 1
        return ((A + 2.0) * x - (A + 3.0)) * x * x + 1.0

    def cc2(x):  # 1 < |x| < 2
        return ((A * x - 5.0 * A) * x + 8.0 * A) * x - 4.0 * A

    scale = in_size / out_size
    M = np.zeros((out_size, in_size), dtype=np.float64)
    for o in range(out_size):
        real = (o + 0.5) * scale - 0.5
        idx = int(np.floor(real))
        t = real - idx
        ws = (cc2(t + 1.0), cc1(t), cc1(1.0 - t), cc2(2.0 - t))
        for k in range(4):
            j = min(max(idx - 1 + k, 0), in_size - 1)
            M[o, j] += ws[k]
    return M.astype(np.float32)


# ---------------------------------------------------------------------------
# Kernel 1: fused forward resize (3 channels) + clamp + 1x1 depth head + clamp.
#   per channel c:  y_c = clip( Wh_tile @ x[c] @ WwT , 0, 1 )
#   depth_tile     = clip( sum_c w[c] * y_c + b , 0, 1 )
# Wh_tile is an output-row tile -> grid (N, S // _FWD_ROW_TILE), both parallel
# (keeps both v7x TensorCores busy even for N == 1).  Head weights/bias arrive
# via scalar prefetch (SMEM).
# ---------------------------------------------------------------------------
def _fused_resize_head_kernel(w_ref, b_ref, wh_ref, wwT_ref, x_ref, o_ref):
    depth = None
    for c in range(3):                                   # static unroll, 3 channels
        t = jnp.dot(wh_ref[...], x_ref[c],               # (TQ, IH) @ (IH, IW) bf16 MXU
                    preferred_element_type=jnp.float32)
        y = jnp.dot(t.astype(jnp.bfloat16), wwT_ref[...],  # (TQ, IW) @ (IW, S) bf16 MXU
                    preferred_element_type=jnp.float32)
        y = jnp.clip(y, 0.0, 1.0)                        # img_trans clamp
        contrib = w_ref[c] * y
        depth = contrib if depth is None else depth + contrib
    depth = jnp.clip(depth + b_ref[0], 0.0, 1.0)         # model-output clamp
    o_ref[...] = depth.astype(o_ref.dtype)


def fused_resize_head(x_bf16, wh, wwT, head_w, head_b, img_size):
    """x_bf16: (N, 3, IH, IW) bf16 -> depth (N, S, S) bf16."""
    N, C, IH, IW = x_bf16.shape
    S = img_size
    TQ = _FWD_ROW_TILE
    n_rt = S // TQ

    return pl.pallas_call(
        _fused_resize_head_kernel,
        out_shape=jax.ShapeDtypeStruct((N, S, S), jnp.bfloat16),
        grid_spec=pltpu.PrefetchScalarGridSpec(
            num_scalar_prefetch=2,
            grid=(N, n_rt),
            in_specs=[
                pl.BlockSpec((TQ, IH), lambda n, r, w, b: (r, 0)),          # Wh row tile
                pl.BlockSpec((IW, S), lambda n, r, w, b: (0, 0)),           # Ww^T (whole)
                pl.BlockSpec((None, C, IH, IW), lambda n, r, w, b: (n, 0, 0, 0)),
            ],
            out_specs=pl.BlockSpec((None, TQ, S), lambda n, r, w, b: (n, r, 0)),
        ),
        compiler_params=pltpu.CompilerParams(
            dimension_semantics=("parallel", "parallel"),
            vmem_limit_bytes=_VMEM_LIMIT),
    )(head_w, head_b, wh, wwT, x_bf16)


# ---------------------------------------------------------------------------
# Kernel 2: back bicubic resize of the depth map, tiled over output rows.
#   out_tile = Wh_tile @ x @ WwT        (no clamp; matches F.interpolate output)
# Output width is padded to a multiple of 128 (lane-dense stores); output rows
# padded to the row tile.  Padding is sliced away in the wrapper.
# ---------------------------------------------------------------------------
def _resize_kernel(wh_ref, wwT_ref, x_ref, o_ref):
    t = jnp.dot(wh_ref[...], x_ref[...], preferred_element_type=jnp.float32)
    y = jnp.dot(t.astype(jnp.bfloat16), wwT_ref[...],
                preferred_element_type=jnp.float32)
    o_ref[...] = y.astype(o_ref.dtype)


def bicubic_resize_rows(x_bf16, wh_np, wwT_np, row_tile=_BWD_ROW_TILE):
    """x_bf16: (B, IH, IW) bf16; wh_np: (OH, IH); wwT_np: (IW, OW) -> (B, OH, OW) f32."""
    B, IH, IW = x_bf16.shape
    OH, OW = wh_np.shape[0], wwT_np.shape[1]

    OWp = _round_up(OW, 128)                      # lane-dense output width
    t_oh = _round_up(OH, 8) if OH <= row_tile else row_tile
    OHp = _round_up(OH, t_oh)
    n_rt = OHp // t_oh

    wh_p = np.zeros((OHp, IH), np.float32)
    wh_p[:OH] = wh_np
    wwT_p = np.zeros((IW, OWp), np.float32)
    wwT_p[:, :OW] = wwT_np
    wh = jnp.asarray(wh_p, jnp.bfloat16)
    wwT = jnp.asarray(wwT_p, jnp.bfloat16)

    out = pl.pallas_call(
        _resize_kernel,
        out_shape=jax.ShapeDtypeStruct((B, OHp, OWp), jnp.float32),
        grid_spec=pl.GridSpec(
            grid=(B, n_rt),
            in_specs=[
                pl.BlockSpec((t_oh, IH), lambda b, r: (r, 0)),        # Wh row tile
                pl.BlockSpec((IW, OWp), lambda b, r: (0, 0)),         # Ww^T (whole)
                pl.BlockSpec((None, IH, IW), lambda b, r: (b, 0, 0)),  # one depth plane
            ],
            out_specs=pl.BlockSpec((None, t_oh, OWp), lambda b, r: (b, r, 0)),
        ),
        compiler_params=pltpu.CompilerParams(
            dimension_semantics=("parallel", "parallel"),
            vmem_limit_bytes=_VMEM_LIMIT),
    )(wh, wwT, x_bf16)
    return out[:, :OH, :OW]


# ---------------------------------------------------------------------------
# DepthEstimator.forward (mode='test'/'train' -> inference) equivalent.
# ---------------------------------------------------------------------------
def depth_estimator_forward(input_img, head_w, head_b):
    x = jnp.asarray(input_img, jnp.float32)
    if x.ndim == 3:                                  # add batch dim
        x = x[None]
    if x.shape[-1] in (1, 3):                        # NHWC -> NCHW (same heuristic as PyTorch)
        x = jnp.transpose(x, (0, 3, 1, 2))
    if x.shape[1] == 1:                              # gray -> 3 channels
        x = jnp.repeat(x, 3, axis=1)

    N, C, h, w = x.shape
    img_size = 384 if (h <= 512 and w <= 512) else 512

    # Forward bicubic weights; Ww is pre-transposed so the kernel is transpose-free.
    wh_fwd = jnp.asarray(bicubic_matrix(img_size, h), jnp.bfloat16)          # (S, h)
    wwT_fwd = jnp.asarray(bicubic_matrix(img_size, w).T, jnp.bfloat16)       # (w, S)

    # Fused: resize+clamp + 1x1 depth head + clamp  -> (N, S, S)
    depth = fused_resize_head(x.astype(jnp.bfloat16), wh_fwd, wwT_fwd,
                              head_w, head_b, img_size)

    # interpolate(output.unsqueeze(0), (h, w), bicubic).squeeze(0) -> (N, h, w)
    wh_bwd = bicubic_matrix(h, img_size)                                     # (h, S)
    wwT_bwd = bicubic_matrix(w, img_size).T                                  # (S, w)
    out = bicubic_resize_rows(depth, wh_bwd, wwT_bwd)
    return out


if __name__ == "__main__":
    key = jax.random.PRNGKey(0)
    # Small NHWC RGB input, consistent with DepthEstimator.inference handling.
    input_img = jax.random.uniform(key, (2, 16, 16, 3), dtype=jnp.float32)

    # Deterministic stand-in head parameters (1x1 conv 3->1 + bias).
    head_w = jnp.array([0.299, 0.587, 0.114], dtype=jnp.float32)
    head_b = jnp.array([0.05], dtype=jnp.float32)

    out = depth_estimator_forward(input_img, head_w, head_b)
    out = jax.block_until_ready(out)

    assert out.shape == (2, 16, 16), out.shape
    assert out.dtype == jnp.float32
    assert bool(jnp.all(jnp.isfinite(out)))
    print("KERNEL_OK")
</pallas_src>

<mosaic_0001>
module attributes {stable_mosaic.version = 11 : i64} {
  func.func @_fused_resize_head_kernel(%arg0: i32, %arg1: i32, %arg2: memref<3xf32, #tpu.memory_space<smem>>, %arg3: memref<1xf32, #tpu.memory_space<smem>>, %arg4: memref<128x16xbf16, #tpu.memory_space<vmem>>, %arg5: memref<16x384xbf16, #tpu.memory_space<vmem>>, %arg6: memref<1x3x16x16xbf16, #tpu.memory_space<vmem>>, %arg7: memref<1x128x384xbf16, #tpu.memory_space<vmem>>) attributes {dimension_semantics = [#tpu.dimension_semantics<parallel>, #tpu.dimension_semantics<parallel>], iteration_bounds = array<i64: 2, 3>, scalar_prefetch = 2 : i64, scratch_operands = 0 : i64, tpu.core_type = #tpu.core_type<tc>, window_params = [{transform_indices = @transform_0, window_bounds = array<i64: 128, 16>}, {pipeline_mode = #tpu.pipeline_mode<synchronous>, transform_indices = @transform_1, window_bounds = array<i64: 16, 384>}, {transform_indices = @transform_2, window_bounds = array<i64: 1, 3, 16, 16>}, {transform_indices = @transform_3, window_bounds = array<i64: 1, 128, 384>}]} {
    %c0 = arith.constant 0 : index
    %c0_0 = arith.constant 0 : index
    %0 = vector.load %arg4[%c0, %c0_0] : memref<128x16xbf16, #tpu.memory_space<vmem>>, vector<128x16xbf16>
    %c0_1 = arith.constant 0 : index
    %c0_2 = arith.constant 0 : index
    %c0_3 = arith.constant 0 : index
    %c0_4 = arith.constant 0 : index
    %1 = vector.load %arg6[%c0_1, %c0_2, %c0_3, %c0_4] : memref<1x3x16x16xbf16, #tpu.memory_space<vmem>>, vector<1x1x16x16xbf16>
    %2 = vector.shape_cast %1 : vector<1x1x16x16xbf16> to vector<16x16xbf16>
    %cst = arith.constant dense<0.000000e+00> : vector<128x16xf32>
    %3 = tpu.matmul %0, %2, %cst {dimension_numbers = #tpu.dot_dimension_numbers<[1], [0], [0], [1], [0, 0, 1, 1], [], []>} : vector<128x16xbf16>, vector<16x16xbf16>, vector<128x16xf32> -> vector<128x16xf32>
    %4 = arith.truncf %3 : vector<128x16xf32> to vector<128x16xbf16>
    %c0_5 = arith.constant 0 : index
    %c0_6 = arith.constant 0 : index
    %5 = vector.load %arg5[%c0_5, %c0_6] : memref<16x384xbf16, #tpu.memory_space<vmem>>, vector<16x384xbf16>
    %cst_7 = arith.constant dense<0.000000e+00> : vector<128x384xf32>
    %6 = tpu.matmul %4, %5, %cst_7 {dimension_numbers = #tpu.dot_dimension_numbers<[1], [0], [0], [1], [0, 0, 1, 1], [], []>} : vector<128x16xbf16>, vector<16x384xbf16>, vector<128x384xf32> -> vector<128x384xf32>
    %cst_8 = arith.constant 0.000000e+00 : f32
    %cst_9 = arith.constant 1.000000e+00 : f32
    %7 = vector.broadcast %cst_8 : f32 to vector<128x384xf32>
    %8 = arith.maximumf %7, %6 : vector<128x384xf32>
    %9 = vector.broadcast %cst_9 : f32 to vector<128x384xf32>
    %10 = arith.minimumf %9, %8 : vector<128x384xf32>
    %c0_10 = arith.constant 0 : index
    %11 = memref.load %arg2[%c0_10] : memref<3xf32, #tpu.memory_space<smem>>
    %12 = vector.broadcast %11 : f32 to vector<128x384xf32>
    %13 = arith.mulf %12, %10 : vector<128x384xf32>
    %c0_11 = arith.constant 0 : index
    %c0_12 = arith.constant 0 : index
    %14 = vector.load %arg4[%c0_11, %c0_12] : memref<128x16xbf16, #tpu.memory_space<vmem>>, vector<128x16xbf16>
    %c0_13 = arith.constant 0 : index
    %c1 = arith.constant 1 : index
    %c0_14 = arith.constant 0 : index
    %c0_15 = arith.constant 0 : index
    %15 = vector.load %arg6[%c0_13, %c1, %c0_14, %c0_15] : memref<1x3x16x16xbf16, #tpu.memory_space<vmem>>, vector<1x1x16x16xbf16>
    %16 = vector.shape_cast %15 : vector<1x1x16x16xbf16> to vector<16x16xbf16>
    %cst_16 = arith.constant dense<0.000000e+00> : vector<128x16xf32>
    %17 = tpu.matmul %14, %16, %cst_16 {dimension_numbers = #tpu.dot_dimension_numbers<[1], [0], [0], [1], [0, 0, 1, 1], [], []>} : vector<128x16xbf16>, vector<16x16xbf16>, vector<128x16xf32> -> vector<128x16xf32>
    %18 = arith.truncf %17 : vector<128x16xf32> to vector<128x16xbf16>
    %c0_17 = arith.constant 0 : index
    %c0_18 = arith.constant 0 : index
    %19 = vector.load %arg5[%c0_17, %c0_18] : memref<16x384xbf16, #tpu.memory_space<vmem>>, vector<16x384xbf16>
    %cst_19 = arith.constant dense<0.000000e+00> : vector<128x384xf32>
    %20 = tpu.matmul %18, %19, %cst_19 {dimension_numbers = #tpu.dot_dimension_numbers<[1], [0], [0], [1], [0, 0, 1, 1], [], []>} : vector<128x16xbf16>, vector<16x384xbf16>, vector<128x384xf32> -> vector<128x384xf32>
    %cst_20 = arith.constant 0.000000e+00 : f32
    %cst_21 = arith.constant 1.000000e+00 : f32
    %21 = vector.broadcast %cst_20 : f32 to vector<128x384xf32>
    %22 = arith.maximumf %21, %20 : vector<128x384xf32>
    %23 = vector.broadcast %cst_21 : f32 to vector<128x384xf32>
    %24 = arith.minimumf %23, %22 : vector<128x384xf32>
    %c1_22 = arith.constant 1 : index
    %25 = memref.load %arg2[%c1_22] : memref<3xf32, #tpu.memory_space<smem>>
    %26 = vector.broadcast %25 : f32 to vector<128x384xf32>
    %27 = arith.mulf %26, %24 : vector<128x384xf32>
    %28 = arith.addf %13, %27 : vector<128x384xf32>
    %c0_23 = arith.constant 0 : index
    %c0_24 = arith.constant 0 : index
    %29 = vector.load %arg4[%c0_23, %c0_24] : memref<128x16xbf16, #tpu.memory_space<vmem>>, vector<128x16xbf16>
    %c0_25 = arith.constant 0 : index
    %c2 = arith.constant 2 : index
    %c0_26 = arith.constant 0 : index
    %c0_27 = arith.constant 0 : index
    %30 = vector.load %arg6[%c0_25, %c2, %c0_26, %c0_27] : memref<1x3x16x16xbf16, #tpu.memory_space<vmem>>, vector<1x1x16x16xbf16>
    %31 = vector.shape_cast %30 : vector<1x1x16x16xbf16> to vector<16x16xbf16>
    %cst_28 = arith.constant dense<0.000000e+00> : vector<128x16xf32>
    %32 = tpu.matmul %29, %31, %cst_28 {dimension_numbers = #tpu.dot_dimension_numbers<[1], [0], [0], [1], [0, 0, 1, 1], [], []>} : vector<128x16xbf16>, vector<16x16xbf16>, vector<128x16xf32> -> vector<128x16xf32>
    %33 = arith.truncf %32 : vector<128x16xf32> to vector<128x16xbf16>
    %c0_29 = arith.constant 0 : index
    %c0_30 = arith.constant 0 : index
    %34 = vector.load %arg5[%c0_29, %c0_30] : memref<16x384xbf16, #tpu.memory_space<vmem>>, vector<16x384xbf16>
    %cst_31 = arith.constant dense<0.000000e+00> : vector<128x384xf32>
    %35 = tpu.matmul %33, %34, %cst_31 {dimension_numbers = #tpu.dot_dimension_numbers<[1], [0], [0], [1], [0, 0, 1, 1], [], []>} : vector<128x16xbf16>, vector<16x384xbf16>, vector<128x384xf32> -> vector<128x384xf32>
    %cst_32 = arith.constant 0.000000e+00 : f32
    %cst_33 = arith.constant 1.000000e+00 : f32
    %36 = vector.broadcast %cst_32 : f32 to vector<128x384xf32>
    %37 = arith.maximumf %36, %35 : vector<128x384xf32>
    %38 = vector.broadcast %cst_33 : f32 to vector<128x384xf32>
    %39 = arith.minimumf %38, %37 : vector<128x384xf32>
    %c2_34 = arith.constant 2 : index
    %40 = memref.load %arg2[%c2_34] : memref<3xf32, #tpu.memory_space<smem>>
    %41 = vector.broadcast %40 : f32 to vector<128x384xf32>
    %42 = arith.mulf %41, %39 : vector<128x384xf32>
    %43 = arith.addf %28, %42 : vector<128x384xf32>
    %c0_35 = arith.constant 0 : index
    %44 = memref.load %arg3[%c0_35] : memref<1xf32, #tpu.memory_space<smem>>
    %45 = vector.broadcast %44 : f32 to vector<128x384xf32>
    %46 = arith.addf %43, %45 : vector<128x384xf32>
    %cst_36 = arith.constant 0.000000e+00 : f32
    %cst_37 = arith.constant 1.000000e+00 : f32
    %47 = vector.broadcast %cst_36 : f32 to vector<128x384xf32>
    %48 = arith.maximumf %47, %46 : vector<128x384xf32>
    %49 = vector.broadcast %cst_37 : f32 to vector<128x384xf32>
    %50 = arith.minimumf %49, %48 : vector<128x384xf32>
    %51 = arith.truncf %50 : vector<128x384xf32> to vector<128x384xbf16>
    %c0_38 = arith.constant 0 : index
    %c0_39 = arith.constant 0 : index
    %c0_40 = arith.constant 0 : index
    %52 = vector.load %arg7[%c0_38, %c0_39, %c0_40] : memref<1x128x384xbf16, #tpu.memory_space<vmem>>, vector<1x128x384xbf16>
    %53 = vector.shape_cast %52 : vector<1x128x384xbf16> to vector<128x384xbf16>
    %54 = vector.shape_cast %51 : vector<128x384xbf16> to vector<1x128x384xbf16>
    tpu.vector_store %arg7[%c0_38, %c0_39, %c0_40], %54 {strides = array<i32>} : memref<1x128x384xbf16, #tpu.memory_space<vmem>>, vector<1x128x384xbf16>,
    return
  }
  func.func @transform_0(%arg0: i32, %arg1: i32, %arg2: memref<3xf32, #tpu.memory_space<smem>>, %arg3: memref<1xf32, #tpu.memory_space<smem>>) -> (i32, i32) {
    %c0_i32 = arith.constant 0 : i32
    %c0_i32_0 = arith.constant 0 : i32
    return %arg1, %c0_i32 : i32, i32
  }
  func.func @transform_1(%arg0: i32, %arg1: i32, %arg2: memref<3xf32, #tpu.memory_space<smem>>, %arg3: memref<1xf32, #tpu.memory_space<smem>>) -> (i32, i32) {
    %c0_i32 = arith.constant 0 : i32
    %c0_i32_0 = arith.constant 0 : i32
    %c0_i32_1 = arith.constant 0 : i32
    return %c0_i32, %c0_i32_0 : i32, i32
  }
  func.func @transform_2(%arg0: i32, %arg1: i32, %arg2: memref<3xf32, #tpu.memory_space<smem>>, %arg3: memref<1xf32, #tpu.memory_space<smem>>) -> (i32, i32, i32, i32) {
    %c0_i32 = arith.constant 0 : i32
    %c0_i32_0 = arith.constant 0 : i32
    %c0_i32_1 = arith.constant 0 : i32
    %c0_i32_2 = arith.constant 0 : i32
    return %arg0, %c0_i32, %c0_i32_0, %c0_i32_1 : i32, i32, i32, i32
  }
  func.func @transform_3(%arg0: i32, %arg1: i32, %arg2: memref<3xf32, #tpu.memory_space<smem>>, %arg3: memref<1xf32, #tpu.memory_space<smem>>) -> (i32, i32, i32) {
    %c0_i32 = arith.constant 0 : i32
    %c0_i32_0 = arith.constant 0 : i32
    return %arg0, %arg1, %c0_i32 : i32, i32, i32
  }
}

</mosaic_0001>

<bundles_post_ra>
// kernel: tpu_custom_call.1
= control target key start
LH: loop header
LB: loop body
LE: loop exit
PB: predicated region body
PF: predicated region fallthrough
CT: control target
= control target key end

     0   :  { %s3956_s0 = inlined_call_operand.vmem [shape: f32[3], index: 0, kind: input, shape index: {}]   ;;  %s3957_s1 = inlined_call_operand.<no memory space> [shape: f32[1], index: 1, kind: input, shape index: {}]   ;;  %s3958_s2 = inlined_call_operand.vmem [shape: bf16[384,16], index: 2, kind: input, shape index: {}]   ;;  %s3959_s3 = inlined_call_operand.vmem [shape: bf16[16,384], index: 3, kind: input, shape index: {}]   ;;  %s3960_s4 = inlined_call_operand.vmem [shape: bf16[2,3,16,16], index: 4, kind: input, shape index: {}]   ;;  %s3961_s5 = inlined_call_operand.hbm [shape: bf16[2,384,384], index: 5, kind: output, shape index: {}]  }
   0x1   :  { %s10_s20 = sshll.u32 %s3956_s0, 4  ;;  %14 = sst [smem:[#allocation4]] %s3957_s1  ;;  %s11_s20 = int_to_ptr.vmem [resolvable:$true] %s10_s20 }
   0x2   :  { %s2762_s23 = scalar_lea.vmem %s11_s20, 16  ;;  %p2767_p1 = scmp.lt.s32.totalorder %s11_s20, %s11_s20 }
   0x3   :  { %p2763_p0 = scmp.ne.s32.totalorder %s11_s20, %s2762_s23  ;;  %p2768_p2 = scmp.lt.s32.totalorder %s2762_s23, %s2762_s23 }
   0x5   :  { %p2769_p3 = por %p2768_p2, %p2767_p1 }
   0x7   :  { %p2770_p4 = pnand %p2769_p3, %p2763_p0 }
   0x9   :  { %2773 = shalt.err (!%p2770_p4)  }
   0xa   :  { %s2872_s24 = smov [#allocation3]  }
   0xb   :  { %13 = dma.vmem_to_smem %s11_s20, 16, %s2872_s24, [#allocation2] }
   0xc   :  { %2834 = dma.done.wait [#allocation2], 16 }
   0xd   :  { %2835 = vsyncadd [#allocation2], 4294967280 }
   0xe   :  { %16 = sfence }
   0xf   :  { %17 = vsyncpa [#allocation6], 0 }
  0x10   :  { %19 = vsyncpa [#allocation6 + $0x1], 0  ;;  %s2913_s0 = smov 0   ;;  %s2915_s25 = smov 0  }
  0x11   :  { %s2917_s1 = smov 0   ;;  %s2919_s26 = smov 0  }
  0x12   :  { %s2921_s27 = smov 0   ;;  %s2923_s28 = smov 0  }
  0x13   :  { %s2925_s29 = smov 0   ;;  %s2927_s30 = smov 0  }
  0x14 LB: > { %s2337_s6 = sadd.s32 4294967295, %s2870_s30   ;;  %s2338_s7 = sadd.s32 4294967294, %s2870_s30   ;;  %s2870_s30 = sphi %s2927_s30, %s25_s30   ;;  %s2866_s29 = sphi %s2925_s29, %s4031_s29   ;;  %s2862_s28 = sphi %s2923_s28, %s4030_s28   ;;  %s2858_s27 = sphi %s2921_s27, %s4029_s27   ;;  %s2854_s26 = sphi %s2919_s26, %s4028_s26   ;;  %s2850_s1 = sphi %s2917_s1, %s4027_s1   ;;  %s2846_s25 = sphi %s2915_s25, %s4026_s25   ;;  %s2842_s0 = sphi %s2913_s0, %s4025_s0  }
  0x15   : > { %s34_s8 = sadd.s32 1, %s2862_s28  ;;  %s37_s9 = sadd.s32 1, %s2866_s29 }
  0x16   : > { %p35_p5 = scmp.ge.s32.totalorder %s34_s8, 3  ;;  %p129_p6 = scmp.ne.s32.totalorder %s2850_s1, %s2846_s25 }
  0x17   : > { %p130_p7 = scmp.eq.s32.totalorder %s2337_s6, 5  ;;  %p135_p10 = scmp.ne.s32.totalorder %s2846_s25, %s2842_s0 }
  0x18   : > { %s4033_s8 = smov (%p35_p5, %s34_s8), 0  ;;  %s4035_s9 = smov (!%p35_p5, %s37_s9), %s2866_s29 }
  0x19   : > { %s115_s10 = ssub.s32 %s2862_s28, %s4033_s8  ;;  %p2964_p8 = por %p130_p7, %p129_p6 }
  0x1a   : > { %p39_p9 = scmp.ge.s32.totalorder %s4035_s9, 2  ;;  %p136_p11 = scmp.eq.s32.totalorder %s2338_s7, 5 }
  0x1b   : > { %p2341_p12 = scmp.ge.s32.totalorder %s2870_s30, 1  ;;  %p174_p0 = scmp.lt.s32.totalorder %s2870_s30, 7 }
  0x1c   : > { %s4037_s9 = smov (%p39_p9, %s4035_s9), 0  ;;  %p2973_p13 = por %p136_p11, %p135_p10 }
  0x1d   : > { %s114_s13 = ssub.s32 %s2866_s29, %s4037_s9  ;;  %s119_s14 = sadd.s32 1, %s2850_s1 }
  0x1e   : > { %s116_s15 = sor.u32 %s115_s10, %s114_s13  ;;  %p175_p1 = pnand %p2341_p12, %p174_p0 }
  0x1f   : > { %p117_p2 = scmp.eq.s32.totalorder %s116_s15, 0 }
  0x20   : > { %178 = sbr.rel (%p175_p1) target bundleno = 1096 (0x448), region = 32 }
  0x21   : > { %s2982_s16 = scalar_select %p117_p2, %s2850_s1, %s119_s14  }
  0x27   : > { %p209_p3 = scmp.lt.s32.totalorder %s2858_s27, 1  ;;  %s2342_s17 = sshll.u32 %s2854_s26, 4  ;;  %v2998_v0 = vld [vmem:[%s3959_s3 + $0x8] ss:$12 sps:$4 sm:$0xff]   ;;  %vm280_vm0 = vcmask 130048   ;;  %v3962_v12 = vmov 0  }
  0x28   : > { %p204_p4 = scmp.lt.s32.totalorder %s2342_s17, 47  ;;  %v2757_v10 = vld [vmem:[%s3959_s3 + $0x4] ss:$12 sps:$4 sm:$0xff]   ;;  %v3041_v11 = vld [vmem:[%s3959_s3] ss:$12 sps:$4 sm:$0xff]   ;;  %486 = vmatprep.mubr.bf16.mxu1 %v3962_v12  ;;  %s2436_s21 = sld [smem:[#allocation3 + $0x2]] }
  0x29   : > { %s210_s18 = scalar_select %p209_p3, %s2858_s27, 1  ;;  %454 = vmatprep.subr.bf16.mxu1 %v2757_v10 }
  0x2a   : > { %s4039_s17 = smov (!%p204_p4, %s2342_s17), 47  ;;  %455 = vmatpush1.bf16.msra.mxu1 %v3041_v11  ;;  %s1894_s22 = sld [smem:[#allocation4]] }
  0x2b   : > { %s2669_s19 = smul.u32 24, %s210_s18  ;;  %s2343_s20 = sshll.u32 %s4039_s17, 2  ;;  %948 = vmatprep.subr.bf16.mxu1 %v2757_v10 }
  0x2c   : > { %s207_s7 = scalar_lea.vmem %s3958_s2, %s2343_s20  ;;  %s3326_s20 = sld [smem:[#allocation3 + $0x1]] }
  0x2d   : > { %s2990_s23 = scalar_lea.vmem %s3960_s4, %s2669_s19  ;;  %v3001_v2 = vld [vmem:[%s207_s7] sm:$0xff]   ;;  %v3003_v3 = vld [vmem:[%s207_s7 + $0x8] sm:$0xff]   ;;  %v3007_v4 = vld [vmem:[%s207_s7 + $0x10] sm:$0xff]   ;;  %s760_s19 = sld [smem:[#allocation3]] }
  0x2e   : > { %v2747_v1 = vld [vmem:[%s2990_s23] sm:$0xff]   ;;  %2562 = vmatprep.mubr.msk.bf16.mxu0 %vm280_vm0, %v3001_v2  ;;  %v3015_v5 = vld [vmem:[%s207_s7 + $0x18] sm:$0xff]   ;;  %v3023_v7 = vld [vmem:[%s207_s7 + $0x28] sm:$0xff]   ;;  %s2671_s10 = smul.u32 144, %s2858_s27 }
  0x2f   : > { %2560 = vmatprep.subr.bf16.mxu0 %v2747_v1  ;;  %v3017_v6 = vld [vmem:[%s207_s7 + $0x20] sm:$0xff]   ;;  %v3025_v8 = vld [vmem:[%s207_s7 + $0x30] sm:$0xff]   ;;  %v3031_v9 = vld [vmem:[%s207_s7 + $0x38] sm:$0xff]   ;;  %s2670_s7 = smul.u32 48, %s2854_s26 }
  0x30   : > { %2561 = vmatpush3.bf16.msra.mxu0 %v2747_v1  ;;  %v2760_v13 = vld [vmem:[%s2990_s23 + $0x8] sm:$0xff]   ;;  %v2761_v38 = vld [vmem:[%s2990_s23 + $0x10] sm:$0xff]   ;;  %s200_s23 = sand.u32 1, %s2846_s25  }
  0x31   : > { %2578 = vmatprep.subr.bf16.mxu0 %v2998_v0  ;;  %s3633_s24 = smul.u32 192, %s200_s23  ;;  %s2246_s26 = sadd.s32 %s2671_s10, %s2670_s7 }
  0x32   : > { %s2471_s13 = sshll.u32 %s2246_s26, 6  ;;  %s3904_s18 = scalar_lea.sflag [#allocation6], %s200_s23 }
  0x33   : > { %2563 = vmatmul.mubr.msk.bf16.vlgmr.msra.gmra.mrb[0].mxu0 %vm280_vm0, %v3003_v3  ;;  %s3648_s6 = scalar_lea.vmem [#allocation5], %s3633_s24  ;;  %s3899_s17 = scalar_lea.hbm %s3961_s5, %s2471_s13 }
  0x34   : > { %2566 = vmatprep.mubr.msk.bf16.mxu0 %vm280_vm0, %v3007_v4  ;;  %2579 = vmatpush3.bf16.msra.mxu0 %v2998_v0  ;;  %s2249_s27 = sshll.u32 %s3648_s6, 4  ;;  %s3894_s27 = int_to_ptr.vmem [resolvable:$true] %s2249_s27 }
  0x35   : > { %2596 = vmatprep.subr.bf16.mxu0 %v2760_v13 }
  0x3b   : > { %2567 = vmatmul.mubr.msk.bf16.gmra.mrb[4].mxu0 %vm280_vm0, %v3015_v5 }
  0x3c   : > { %2570 = vmatprep.mubr.msk.bf16.mxu0 %vm280_vm0, %v3017_v6 }
  0x43   : > { %2571 = vmatmul.mubr.msk.bf16.gmra.mrb[8].mxu0 %vm280_vm0, %v3023_v7 }
  0x44   : > { %2574 = vmatprep.mubr.msk.bf16.mxu0 %vm280_vm0, %v3025_v8 }
  0x4b   : > { %2575 = vmatmul.mubr.msk.bf16.gmra.mrb[12].mxu0 %vm280_vm0, %v3031_v9 }
 0x106   : > { %v2564_v14 = vpop.f32.mrb[0].mxu0 }
 0x107   : > { %v339_v15 = vpop.f32.mrb[1].mxu0 }
 0x108   : > { %v2565_v16 = vpop.f32.mrb[2].mxu0 }
 0x109   : > { %v403_v17 = vpack.c.bf16 %v2565_v16, %v2564_v14  ;;  %v342_v18 = vpop.f32.mrb[3].mxu0 }
 0x10a   : > { %v402_v19 = vpack.c.bf16 %v342_v18, %v339_v15 }
 0x10c   : > { %2365 = vmatmul.mubr.msk.bf16.vlgmr.msra.gmra.mrb[0].mxu1 %vm280_vm0, %v402_v19  ;;  %2580 = vmatprep.mubr.msk.bf16.mxu0 %vm280_vm0, %v402_v19 }
 0x10d   : > { %2581 = vmatmul.mubr.msk.bf16.vlgmr.msra.gmra.mrb[16].mxu0 %vm280_vm0, %v403_v17  ;;  %496 = vmatprep.mubr.bf16.mxu1 %v3962_v12 }
 0x10e   : > { %2597 = vmatpush3.bf16.msra.mxu0 %v2760_v13  ;;  %v2568_v20 = vpop.f32.mrb[4].mxu0  ;;  %949 = vmatpush1.bf16.msra.mxu1 %v3041_v11 }
 0x10f   : > { %v355_v21 = vpop.f32.mrb[5].mxu0  ;;  %2614 = vmatprep.subr.bf16.mxu0 %v2998_v0  ;;  %1490 = vmatprep.subr.bf16.mxu1 %v2757_v10 }
 0x110   : > { %v2569_v22 = vpop.f32.mrb[6].mxu0 }
 0x111   : > { %v405_v23 = vpack.c.bf16 %v2569_v22, %v2568_v20  ;;  %v358_v24 = vpop.f32.mrb[7].mxu0 }
 0x112   : > { %v404_v25 = vpack.c.bf16 %v358_v24, %v355_v21 }
 0x114   : > { %2366 = vmatmul.mubr.msk.bf16.gmra.mrb[4].mxu1 %vm280_vm0, %v403_v17  ;;  %2584 = vmatprep.mubr.msk.bf16.mxu0 %vm280_vm0, %v404_v25 }
 0x115   : > { %2585 = vmatmul.mubr.msk.bf16.gmra.mrb[20].mxu0 %vm280_vm0, %v405_v23  ;;  %506 = vmatprep.mubr.bf16.mxu1 %v3962_v12 }
 0x116   : > { %v2572_v26 = vpop.f32.mrb[8].mxu0 }
 0x117   : > { %v371_v27 = vpop.f32.mrb[9].mxu0 }
 0x118   : > { %v2573_v28 = vpop.f32.mrb[10].mxu0 }
 0x119   : > { %v407_v29 = vpack.c.bf16 %v2573_v28, %v2572_v26  ;;  %v374_v30 = vpop.f32.mrb[11].mxu0 }
 0x11a   : > { %v406_v31 = vpack.c.bf16 %v374_v30, %v371_v27 }
 0x11c   : > { %2367 = vmatmul.mubr.msk.bf16.gmra.mrb[8].mxu1 %vm280_vm0, %v404_v25  ;;  %2588 = vmatprep.mubr.msk.bf16.mxu0 %vm280_vm0, %v406_v31 }
 0x11d   : > { %2589 = vmatmul.mubr.msk.bf16.gmra.mrb[24].mxu0 %vm280_vm0, %v407_v29  ;;  %516 = vmatprep.mubr.bf16.mxu1 %v3962_v12 }
 0x11e   : > { %v2576_v32 = vpop.f32.mrb[12].mxu0 }
 0x11f   : > { %v387_v33 = vpop.f32.mrb[13].mxu0 }
 0x120   : > { %v2577_v34 = vpop.f32.mrb[14].mxu0 }
 0x121   : > { %v409_v35 = vpack.c.bf16 %v2577_v34, %v2576_v32  ;;  %v390_v36 = vpop.f32.mrb[15].mxu0 }
 0x122   : > { %v408_v37 = vpack.c.bf16 %v390_v36, %v387_v33 }
 0x124   : > { %2368 = vmatmul.mubr.msk.bf16.gmra.mrb[12].mxu1 %vm280_vm0, %v405_v23  ;;  %2592 = vmatprep.mubr.msk.bf16.mxu0 %vm280_vm0, %v408_v37 }
 0x125   : > { %2593 = vmatmul.mubr.msk.bf16.gmra.mrb[28].mxu0 %vm280_vm0, %v409_v35  ;;  %526 = vmatprep.mubr.bf16.mxu1 %v3962_v12 }
 0x126   : > { %2598 = vmatprep.mubr.msk.bf16.mxu0 %vm280_vm0, %v3001_v2 }
 0x12c   : > { %2369 = vmatmul.mubr.msk.bf16.gmra.mrb[16].mxu1 %vm280_vm0, %v406_v31 }
 0x12d   : > { %2599 = vmatmul.mubr.msk.bf16.vlgmr.msra.gmra.mrb[32].mxu0 %vm280_vm0, %v3003_v3  ;;  %536 = vmatprep.mubr.bf16.mxu1 %v3962_v12 }
 0x12e   : > { %2602 = vmatprep.mubr.msk.bf16.mxu0 %vm280_vm0, %v3007_v4  ;;  %2615 = vmatpush3.bf16.msra.mxu0 %v2998_v0 }
 0x12f   : > { %2632 = vmatprep.subr.bf16.mxu0 %v2761_v38 }
 0x134   : > { %2370 = vmatmul.mubr.msk.bf16.gmra.mrb[20].mxu1 %vm280_vm0, %v407_v29 }
 0x135   : > { %2603 = vmatmul.mubr.msk.bf16.gmra.mrb[36].mxu0 %vm280_vm0, %v3015_v5  ;;  %546 = vmatprep.mubr.bf16.mxu1 %v3962_v12 }
 0x136   : > { %2606 = vmatprep.mubr.msk.bf16.mxu0 %vm280_vm0, %v3017_v6 }
 0x13c   : > { %2371 = vmatmul.mubr.msk.bf16.gmra.mrb[24].mxu1 %vm280_vm0, %v408_v37 }
 0x13d   : > { %2607 = vmatmul.mubr.msk.bf16.gmra.mrb[40].mxu0 %vm280_vm0, %v3023_v7  ;;  %556 = vmatprep.mubr.bf16.mxu1 %v3962_v12 }
 0x13e   : > { %2610 = vmatprep.mubr.msk.bf16.mxu0 %vm280_vm0, %v3025_v8 }
 0x144   : > { %2372 = vmatmul.mubr.msk.bf16.gmra.mrb[28].mxu1 %vm280_vm0, %v409_v35 }
 0x145   : > { %2611 = vmatmul.mubr.msk.bf16.gmra.mrb[44].mxu0 %vm280_vm0, %v3031_v9  ;;  %980 = vmatprep.mubr.bf16.mxu1 %v3962_v12 }
 0x1df   : > { %v3090_v39 = vpop.f32.mrb[0].mxu1 }
 0x1e0   : > { %v3092_v40 = vpop.f32.mrb[1].mxu1  ;;  %v3094_v41 = vpop.f32.mrb[16].mxu0 }
 0x1e1   : > { %v3096_v42 = vpop.f32.mrb[2].mxu1  ;;  %v3098_v43 = vpop.f32.mrb[17].mxu0 }
 0x1e2   : > { %v3100_v44 = vpop.f32.mrb[3].mxu1  ;;  %v3102_v45 = vpop.f32.mrb[18].mxu0 }
 0x1e3   : > { %v3104_v46 = vpop.f32.mrb[19].mxu0 }
 0x1e7   : > { %v3106_v47 = vpop.f32.mrb[4].mxu1 }
 0x1e8   : > { %v3108_v48 = vpop.f32.mrb[5].mxu1  ;;  %v3110_v49 = vpop.f32.mrb[20].mxu0 }
 0x1e9   : > { %v3112_v50 = vpop.f32.mrb[6].mxu1  ;;  %v3114_v51 = vpop.f32.mrb[21].mxu0 }
 0x1ea   : > { %v3116_v52 = vpop.f32.mrb[7].mxu1  ;;  %v3118_v53 = vpop.f32.mrb[22].mxu0 }
 0x1eb   : > { %v3120_v54 = vpop.f32.mrb[23].mxu0 }
 0x1ef   : > { %v3122_v55 = vpop.f32.mrb[8].mxu1 }
 0x1f0   : > { %v3124_v56 = vpop.f32.mrb[9].mxu1  ;;  %v3126_v57 = vpop.f32.mrb[24].mxu0 }
 0x1f1   : > { %v3128_v58 = vpop.f32.mrb[10].mxu1  ;;  %v3130_v59 = vpop.f32.mrb[25].mxu0 }
 0x1f2   : > { %v3132_v60 = vpop.f32.mrb[11].mxu1  ;;  %v3134_v61 = vpop.f32.mrb[26].mxu0 }
 0x1f3   : > { %v3136_v62 = vpop.f32.mrb[27].mxu0 }
 0x1f7   : > { %v3138_v63 = vpop.f32.mrb[12].mxu1 }
 0x1f8   : > { %v3140_v1 = vpop.f32.mrb[13].mxu1  ;;  %v3142_v10 = vpop.f32.mrb[28].mxu0 }
 0x1f9   : > { %v3144_v13 = vpop.f32.mrb[14].mxu1  ;;  %v3146_v14 = vpop.f32.mrb[29].mxu0 }
 0x1fa   : > { %v3148_v15 = vpop.f32.mrb[15].mxu1  ;;  %v3150_v16 = vpop.f32.mrb[30].mxu0 }
 0x1fb   : > { %v3152_v17 = vpop.f32.mrb[31].mxu0 }
 0x1fc   : > { %3969 = vst [vmem:[#allocation9_spill] sm:$0xff] %v3152_v17 }
 0x1ff   : > { %v3154_v18 = vpop.f32.mrb[16].mxu1 }
 0x200   : > { %3970 = vst [vmem:[#allocation10_spill] sm:$0xff] %v3154_v18  ;;  %v3156_v19 = vpop.f32.mrb[17].mxu1  ;;  %v2600_v20 = vpop.f32.mrb[32].mxu0 }
 0x201   : > { %3971 = vst [vmem:[#allocation11_spill] sm:$0xff] %v3156_v19  ;;  %v3158_v21 = vpop.f32.mrb[18].mxu1  ;;  %v853_v22 = vpop.f32.mrb[33].mxu0 }
 0x202   : > { %3972 = vst [vmem:[#allocation12_spill] sm:$0xff] %v3158_v21  ;;  %v3160_v23 = vpop.f32.mrb[19].mxu1  ;;  %v2601_v24 = vpop.f32.mrb[34].mxu0 }
 0x203   : > { %3973 = vst [vmem:[#allocation13_spill] sm:$0xff] %v3160_v23  ;;  %v917_v25 = vpack.c.bf16 %v2601_v24, %v2600_v20  ;;  %v856_v26 = vpop.f32.mrb[35].mxu0 }
 0x204   : > { %v916_v27 = vpack.c.bf16 %v856_v26, %v853_v22  ;;  %v3168_v22 = vstv %s760_s19  ;;  %s2774_s19 = scalar_lea.vmem %s3894_s27, 3072 }
 0x205   : > { %p2775_p5 = scmp.ne.s32.totalorder %s3894_s27, %s2774_s19 }
 0x206   : > { %2392 = vmatmul.mubr.msk.bf16.vlgmr.msra.gmra.mrb[32].mxu1 %vm280_vm0, %v916_v27  ;;  %2616 = vmatprep.mubr.msk.bf16.mxu0 %vm280_vm0, %v916_v27 }
 0x207   : > { %v538_v28 = vpop.f32.mrb[20].mxu1  ;;  %2617 = vmatmul.mubr.msk.bf16.vlgmr.msra.gmra.mrb[48].mxu0 %vm280_vm0, %v917_v25  ;;  %990 = vmatprep.mubr.bf16.mxu1 %v3962_v12  ;;  %p2776_p6 = pnand %p2775_p5, %p2964_p8 }
 0x208   : > { %v694_v29 = vmax.f32 %v538_v28, 0.0  ;;  %2633 = vmatpush3.bf16.msra.mxu0 %v2761_v38  ;;  %v540_v30 = vpop.f32.mrb[21].mxu1  ;;  %v2604_v31 = vpop.f32.mrb[36].mxu0  ;;  %1491 = vmatpush1.bf16.msra.mxu1 %v3041_v11 }
 0x209   : > { %v695_v32 = vmax.f32 %v540_v30, 0.0  ;;  %v542_v33 = vpop.f32.mrb[22].mxu1  ;;  %v869_v34 = vpop.f32.mrb[37].mxu0  ;;  %2650 = vmatprep.subr.bf16.mxu0 %v2998_v0  ;;  %p2777_p7 = pneg %p2776_p6 }
 0x20a   : > { %v742_v35 = vmin.f32 %v694_v29, 1.0  ;;  %v697_v36 = vmax.f32 %v542_v33, 0.0  ;;  %v544_v37 = vpop.f32.mrb[23].mxu1  ;;  %v2605_v20 = vpop.f32.mrb[38].mxu0  ;;  %v3978_v33 = vmov 0  }
 0x20b   : > { %v743_v24 = vmin.f32 %v695_v32, 1.0  ;;  %v698_v26 = vmax.f32 %v544_v37, 0.0  ;;  %v919_v27 = vpack.c.bf16 %v2605_v20, %v2604_v31  ;;  %v872_v28 = vpop.f32.mrb[39].mxu0 }
 0x20c   : > { %v3171_v38 = vmul.f32 %v3168_v22, %v742_v35  ;;  %v745_v12 = vmin.f32 %v697_v36, 1.0  ;;  %v918_v11 = vpack.c.bf16 %v872_v28, %v869_v34 }
 0x20d   : > { %v3174_v30 = vmul.f32 %v3168_v22, %v743_v24  ;;  %v746_v23 = vmin.f32 %v698_v26, 1.0 }
 0x20e   : > { %3974 = vst [vmem:[#allocation14_spill] sm:$0xff] %v3171_v38  ;;  %v3177_v29 = vmul.f32 %v3168_v22, %v745_v12  ;;  %2393 = vmatmul.mubr.msk.bf16.gmra.mrb[36].mxu1 %vm280_vm0, %v917_v25  ;;  %2620 = vmatprep.mubr.msk.bf16.mxu0 %vm280_vm0, %v918_v11 }
 0x20f   : > { %3975 = vst [vmem:[#allocation15_spill] sm:$0xff] %v3174_v30  ;;  %v3182_v32 = vmul.f32 %v3168_v22, %v746_v23  ;;  %v548_v31 = vpop.f32.mrb[24].mxu1  ;;  %2621 = vmatmul.mubr.msk.bf16.gmra.mrb[52].mxu0 %vm280_vm0, %v919_v27  ;;  %1000 = vmatprep.mubr.bf16.mxu1 %v3978_v33 }
 0x210   : > { %3976 = vst [vmem:[#allocation16_spill] sm:$0xff] %v3177_v29  ;;  %v700_v34 = vmax.f32 %v548_v31, 0.0  ;;  %v550_v35 = vpop.f32.mrb[25].mxu1  ;;  %v2608_v36 = vpop.f32.mrb[40].mxu0 }
 0x211   : > { %3977 = vst [vmem:[#allocation17_spill] sm:$0xff] %v3182_v32  ;;  %v701_v37 = vmax.f32 %v550_v35, 0.0  ;;  %v552_v20 = vpop.f32.mrb[26].mxu1  ;;  %v885_v24 = vpop.f32.mrb[41].mxu0 }
 0x212   : > { %v748_v12 = vmin.f32 %v700_v34, 1.0  ;;  %v703_v26 = vmax.f32 %v552_v20, 0.0  ;;  %v554_v28 = vpop.f32.mrb[27].mxu1  ;;  %v2609_v25 = vpop.f32.mrb[42].mxu0 }
 0x213   : > { %v749_v29 = vmin.f32 %v701_v37, 1.0  ;;  %v704_v30 = vmax.f32 %v554_v28, 0.0  ;;  %v921_v38 = vpack.c.bf16 %v2609_v25, %v2608_v36  ;;  %v888_v23 = vpop.f32.mrb[43].mxu0 }
 0x214   : > { %v3187_v32 = vmul.f32 %v3168_v22, %v748_v12  ;;  %v751_v21 = vmin.f32 %v703_v26, 1.0  ;;  %v920_v19 = vpack.c.bf16 %v888_v23, %v885_v24 }
 0x215   : > { %v3190_v31 = vmul.f32 %v3168_v22, %v749_v29  ;;  %v752_v18 = vmin.f32 %v704_v30, 1.0 }
 0x216   : > { %3979 = vst [vmem:[#allocation18_spill] sm:$0xff] %v3187_v32  ;;  %v3193_v35 = vmul.f32 %v3168_v22, %v751_v21  ;;  %2394 = vmatmul.mubr.msk.bf16.gmra.mrb[40].mxu1 %vm280_vm0, %v918_v11  ;;  %2624 = vmatprep.mubr.msk.bf16.mxu0 %vm280_vm0, %v920_v19 }
 0x217   : > { %3980 = vst [vmem:[#allocation19_spill] sm:$0xff] %v3190_v31  ;;  %v3198_v34 = vmul.f32 %v3168_v22, %v752_v18  ;;  %v558_v36 = vpop.f32.mrb[28].mxu1  ;;  %2625 = vmatmul.mubr.msk.bf16.gmra.mrb[56].mxu0 %vm280_vm0, %v921_v38  ;;  %1010 = vmatprep.mubr.bf16.mxu1 %v3978_v33 }
 0x218   : > { %3981 = vst [vmem:[#allocation20_spill] sm:$0xff] %v3193_v35  ;;  %v706_v37 = vmax.f32 %v558_v36, 0.0  ;;  %v560_v20 = vpop.f32.mrb[29].mxu1  ;;  %v2612_v29 = vpop.f32.mrb[44].mxu0 }
 0x219   : > { %3982 = vst [vmem:[#allocation21_spill] sm:$0xff] %v3198_v34  ;;  %v707_v24 = vmax.f32 %v560_v20, 0.0  ;;  %v562_v30 = vpop.f32.mrb[30].mxu1  ;;  %v901_v12 = vpop.f32.mrb[45].mxu0 }
 0x21a   : > { %v754_v21 = vmin.f32 %v706_v37, 1.0  ;;  %v709_v26 = vmax.f32 %v562_v30, 0.0  ;;  %v564_v28 = vpop.f32.mrb[31].mxu1  ;;  %v2613_v11 = vpop.f32.mrb[46].mxu0 }
 0x21b   : > { %v755_v25 = vmin.f32 %v707_v24, 1.0  ;;  %v710_v23 = vmax.f32 %v564_v28, 0.0  ;;  %v923_v35 = vpack.c.bf16 %v2613_v11, %v2612_v29  ;;  %v904_v18 = vpop.f32.mrb[47].mxu0 }
 0x21c   : > { %v3203_v34 = vmul.f32 %v3168_v22, %v754_v21  ;;  %v757_v31 = vmin.f32 %v709_v26, 1.0  ;;  %v922_v32 = vpack.c.bf16 %v904_v18, %v901_v12 }
 0x21d   : > { %v3206_v36 = vmul.f32 %v3168_v22, %v755_v25  ;;  %v758_v17 = vmin.f32 %v710_v23, 1.0 }
 0x21e   : > { %v3209_v20 = vmul.f32 %v3168_v22, %v757_v31  ;;  %2395 = vmatmul.mubr.msk.bf16.gmra.mrb[44].mxu1 %vm280_vm0, %v919_v27  ;;  %2628 = vmatprep.mubr.msk.bf16.mxu0 %vm280_vm0, %v922_v32 }
 0x21f   : > { %v3214_v37 = vmul.f32 %v3168_v22, %v758_v17  ;;  %2629 = vmatmul.mubr.msk.bf16.gmra.mrb[60].mxu0 %vm280_vm0, %v923_v35  ;;  %1020 = vmatprep.mubr.bf16.mxu1 %v3978_v33  ;;  %v669_v17 = vmax.f32 %v3104_v46, 0.0  ;;  %v681_v46 = vmax.f32 %v3120_v54, 0.0  ;;  %v676_v54 = vmax.f32 %v3122_v55, 0.0 }
 0x220   : > { %2634 = vmatprep.mubr.msk.bf16.mxu0 %vm280_vm0, %v3001_v2 }
 0x221   : > { %3983 = vst [vmem:[#allocation22_spill] sm:$0xff] %v3214_v37  ;;  %v729_v12 = vmin.f32 %v681_v46, 1.0 }
 0x226   : > { %2396 = vmatmul.mubr.msk.bf16.gmra.mrb[48].mxu1 %vm280_vm0, %v920_v19  ;;  %v671_v19 = vmax.f32 %v3108_v48, 0.0 }
 0x227   : > { %2635 = vmatmul.mubr.msk.bf16.vlgmr.msra.gmra.mrb[64].mxu0 %vm280_vm0, %v3003_v3  ;;  %1030 = vmatprep.mubr.bf16.mxu1 %v3978_v33  ;;  %v665_v3 = vmax.f32 %v3092_v40, 0.0  ;;  %v673_v40 = vmax.f32 %v3112_v50, 0.0 }
 0x228   : > { %2638 = vmatprep.mubr.msk.bf16.mxu0 %vm280_vm0, %v3007_v4  ;;  %2651 = vmatpush3.bf16.msra.mxu0 %v2998_v0  ;;  %v664_v0 = vmax.f32 %v3090_v39, 0.0  ;;  %v672_v4 = vmax.f32 %v3094_v41, 0.0  ;;  %v684_v39 = vmax.f32 %v3110_v49, 0.0  ;;  %v678_v41 = vmax.f32 %v3114_v51, 0.0 }
 0x229   : > { %v717_v49 = vmin.f32 %v669_v17, 1.0  ;;  %v719_v50 = vmin.f32 %v671_v19, 1.0  ;;  %v721_v51 = vmin.f32 %v673_v40, 1.0  ;;  %v679_v17 = vmax.f32 %v3128_v58, 0.0 }
 0x22a   : > { %v712_v2 = vmin.f32 %v664_v0, 1.0  ;;  %v720_v27 = vmin.f32 %v672_v4, 1.0  ;;  %v726_v29 = vmin.f32 %v678_v41, 1.0  ;;  %v680_v19 = vmax.f32 %v3132_v60, 0.0 }
 0x22b   : > { %v3282_v25 = vmul.f32 %v3168_v22, %v717_v49  ;;  %v3288_v55 = vmul.f32 %v3168_v22, %v719_v50  ;;  %v3294_v0 = vmul.f32 %v3168_v22, %v721_v51  ;;  %v693_v40 = vmax.f32 %v3136_v62, 0.0  ;;  %v3984_v62 = vld [vmem:[#allocation9_spill] sm:$0xff] }
 0x22c   : > { %v3266_v30 = vmul.f32 %v3168_v22, %v720_v27  ;;  %v682_v41 = vmax.f32 %v3138_v63, 0.0  ;;  %v686_v58 = vmax.f32 %v3148_v15, 0.0  ;;  %v705_v27 = vmax.f32 %v3984_v62, 0.0 }
 0x22d   : > { %v727_v63 = vmin.f32 %v679_v17, 1.0  ;;  %v3379_v62 = vstv %s3326_s20  ;;  %s2874_s20 = smov [#allocation5]  }
 0x22e   : > { %2397 = vmatmul.mubr.msk.bf16.gmra.mrb[52].mxu1 %vm280_vm0, %v921_v38  ;;  %v753_v50 = vmin.f32 %v705_v27, 1.0 }
 0x22f   : > { %2639 = vmatmul.mubr.msk.bf16.gmra.mrb[68].mxu0 %vm280_vm0, %v3015_v5  ;;  %1040 = vmatprep.mubr.bf16.mxu1 %v3978_v33  ;;  %v667_v5 = vmax.f32 %v3096_v42, 0.0  ;;  %v674_v42 = vmax.f32 %v3116_v52, 0.0 }
 0x230   : > { %2642 = vmatprep.mubr.msk.bf16.mxu0 %vm280_vm0, %v3017_v6  ;;  %v666_v6 = vmax.f32 %v3098_v43, 0.0  ;;  %v687_v43 = vmax.f32 %v3118_v53, 0.0 }
 0x231   : > { %v722_v52 = vmin.f32 %v674_v42, 1.0  ;;  %v683_v42 = vmax.f32 %v3140_v1, 0.0  ;;  %v728_v1 = vmin.f32 %v680_v19, 1.0 }
 0x232   : > { %v714_v38 = vmin.f32 %v666_v6, 1.0  ;;  %v735_v24 = vmin.f32 %v687_v43, 1.0  ;;  %v724_v6 = vmin.f32 %v676_v54, 1.0  ;;  %v708_v43 = vmax.f32 %v3142_v10, 0.0 }
 0x233   : > { %v741_v10 = vmin.f32 %v693_v40, 1.0 }
 0x234   : > { %v3273_v26 = vmul.f32 %v3168_v22, %v714_v38  ;;  %v3303_v4 = vmul.f32 %v3168_v22, %v735_v24  ;;  %v3323_v60 = vmul.f32 %v3168_v22, %v724_v6  ;;  %v756_v38 = vmin.f32 %v708_v43, 1.0  ;;  %v3986_v43 = vld [vmem:[#allocation11_spill] sm:$0xff] }
 0x235   : > { %v3342_v24 = vmul.f32 %v3168_v22, %v728_v1  ;;  %v3348_v54 = vmul.f32 %v3168_v22, %v741_v10 }
 0x236   : > { %2398 = vmatmul.mubr.msk.bf16.gmra.mrb[56].mxu1 %vm280_vm0, %v922_v32 }
 0x237   : > { %2643 = vmatmul.mubr.msk.bf16.gmra.mrb[72].mxu0 %vm280_vm0, %v3023_v7  ;;  %1050 = vmatprep.mubr.bf16.mxu1 %v3978_v33  ;;  %v668_v7 = vmax.f32 %v3100_v44, 0.0  ;;  %v3259_v44 = vmul.f32 %v3168_v22, %v712_v2  ;;  %v3297_v2 = vmul.f32 %v3168_v22, %v726_v29  ;;  %v3336_v29 = vmul.f32 %v3168_v22, %v727_v63 }
 0x238   : > { %2646 = vmatprep.mubr.msk.bf16.mxu0 %vm280_vm0, %v3025_v8  ;;  %v675_v8 = vmax.f32 %v3102_v45, 0.0  ;;  %v713_v45 = vmin.f32 %v665_v3, 1.0  ;;  %v3300_v3 = vmul.f32 %v3168_v22, %v722_v52 }
 0x239   : > { %v716_v48 = vmin.f32 %v668_v7, 1.0  ;;  %v677_v7 = vmax.f32 %v3124_v56, 0.0  ;;  %v685_v56 = vmax.f32 %v3144_v13, 0.0  ;;  %v730_v13 = vmin.f32 %v682_v41, 1.0 }
 0x23a   : > { %v723_v32 = vmin.f32 %v675_v8, 1.0  ;;  %v3263_v53 = vmul.f32 %v3168_v22, %v713_v45  ;;  %v696_v8 = vmax.f32 %v3126_v57, 0.0  ;;  %v702_v57 = vmax.f32 %v3146_v14, 0.0 }
 0x23b   : > { %v3276_v28 = vmul.f32 %v3168_v22, %v716_v48  ;;  %v731_v14 = vmin.f32 %v683_v42, 1.0  ;;  %v733_v15 = vmin.f32 %v685_v56, 1.0  ;;  %v3351_v6 = vmul.f32 %v3168_v22, %v730_v13 }
 0x23c   : > { %v3279_v11 = vmul.f32 %v3168_v22, %v723_v32  ;;  %v744_v45 = vmin.f32 %v696_v8, 1.0  ;;  %v750_v48 = vmin.f32 %v702_v57, 1.0  ;;  %v3357_v8 = vmul.f32 %v3168_v22, %v756_v38 }
 0x23d   : > { %v3360_v17 = vmul.f32 %v3168_v22, %v733_v15  ;;  %v3372_v41 = vmul.f32 %v3168_v22, %v753_v50 }
 0x23e   : > { %2399 = vmatmul.mubr.msk.bf16.gmra.mrb[60].mxu1 %vm280_vm0, %v923_v35  ;;  %v732_v35 = vmin.f32 %v684_v39, 1.0  ;;  %v699_v39 = vmax.f32 %v3134_v61, 0.0  ;;  %v725_v61 = vmin.f32 %v677_v7, 1.0  ;;  %v3354_v7 = vmul.f32 %v3168_v22, %v731_v14 }
 0x23f   : > { %2647 = vmatmul.mubr.msk.bf16.gmra.mrb[76].mxu0 %vm280_vm0, %v3031_v9  ;;  %1522 = vmatprep.mubr.bf16.mxu1 %v3978_v33  ;;  %v670_v9 = vmax.f32 %v3106_v47, 0.0  ;;  %v715_v47 = vmin.f32 %v667_v5, 1.0  ;;  %v3306_v5 = vmul.f32 %v3168_v22, %v729_v12 }
 0x240   : > { %v3291_v18 = vmul.f32 %v3168_v22, %v732_v35  ;;  %v3329_v49 = vmul.f32 %v3168_v22, %v725_v61  ;;  %v3985_v35 = vld [vmem:[#allocation10_spill] sm:$0xff]  ;;  %v3987_v61 = vld [vmem:[#allocation12_spill] sm:$0xff] }
 0x241   : > { %v718_v31 = vmin.f32 %v670_v9, 1.0  ;;  %v3270_v21 = vmul.f32 %v3168_v22, %v715_v47  ;;  %v690_v9 = vmax.f32 %v3130_v59, 0.0  ;;  %v711_v59 = vmax.f32 %v3150_v16, 0.0 }
 0x242   : > { %v747_v47 = vmin.f32 %v699_v39, 1.0  ;;  %v734_v16 = vmin.f32 %v686_v58, 1.0  ;;  %v688_v51 = vmax.f32 %v3985_v35, 0.0 }
 0x243   : > { %v3285_v23 = vmul.f32 %v3168_v22, %v718_v31  ;;  %v738_v46 = vmin.f32 %v690_v9, 1.0  ;;  %v759_v32 = vmin.f32 %v711_v59, 1.0  ;;  %v3332_v31 = vmul.f32 %v3168_v22, %v744_v45 }
 0x244   : > { %v3345_v12 = vmul.f32 %v3168_v22, %v747_v47  ;;  %v3363_v9 = vmul.f32 %v3168_v22, %v750_v48  ;;  %v3366_v19 = vmul.f32 %v3168_v22, %v734_v16  ;;  %v3374_v42 = vmin.f32 %v688_v51, 1.0  ;;  %v3988_v47 = vld [vmem:[#allocation13_spill] sm:$0xff] }
 0x245   : > { %v3339_v52 = vmul.f32 %v3168_v22, %v738_v46  ;;  %v3369_v39 = vmul.f32 %v3168_v22, %v759_v32 }
 0x2d9   : > { %v982_v40 = vpop.f32.mrb[32].mxu1 }
 0x2da   : > { %v1158_v57 = vmax.f32 %v982_v40, 0.0  ;;  %v984_v58 = vpop.f32.mrb[33].mxu1  ;;  %v2618_v59 = vpop.f32.mrb[48].mxu0 }
 0x2db   : > { %v1159_v27 = vmax.f32 %v984_v58, 0.0  ;;  %v1166_v63 = vmax.f32 %v2618_v59, 0.0  ;;  %v986_v46 = vpop.f32.mrb[34].mxu1  ;;  %v1095_v1 = vpop.f32.mrb[49].mxu0 }
 0x2dc   : > { %v1206_v13 = vmin.f32 %v1158_v57, 1.0  ;;  %v1161_v14 = vmax.f32 %v986_v46, 0.0  ;;  %v1160_v38 = vmax.f32 %v1095_v1, 0.0  ;;  %v988_v15 = vpop.f32.mrb[35].mxu1  ;;  %v2619_v48 = vpop.f32.mrb[50].mxu0 }
 0x2dd   : > { %v1207_v16 = vmin.f32 %v1159_v27, 1.0  ;;  %v1214_v32 = vmin.f32 %v1166_v63, 1.0  ;;  %v1162_v50 = vmax.f32 %v988_v15, 0.0  ;;  %v1169_v35 = vmax.f32 %v2619_v48, 0.0  ;;  %v1098_v51 = vpop.f32.mrb[51].mxu0 }
 0x2de   : > { %v1256_v40 = vmul.f32 %v3379_v62, %v1206_v13  ;;  %v1209_v45 = vmin.f32 %v1161_v14, 1.0  ;;  %v1208_v56 = vmin.f32 %v1160_v38, 1.0  ;;  %v1163_v58 = vmax.f32 %v1098_v51, 0.0 }
 0x2df   : > { %v1257_v59 = vmul.f32 %v3379_v62, %v1207_v16  ;;  %v1264_v37 = vmul.f32 %v3379_v62, %v1214_v32  ;;  %v1210_v10 = vmin.f32 %v1162_v50, 1.0  ;;  %v1217_v57 = vmin.f32 %v1169_v35, 1.0 }
 0x2e0   : > { %v3386_v46 = vadd.f32 %v1256_v40, %v3259_v44  ;;  %v1259_v27 = vmul.f32 %v3379_v62, %v1209_v45  ;;  %v1258_v63 = vmul.f32 %v3379_v62, %v1208_v56  ;;  %v1211_v1 = vmin.f32 %v1163_v58, 1.0 }
 0x2e1   : > { %v3391_v15 = vadd.f32 %v1257_v59, %v3263_v53  ;;  %v3394_v13 = vadd.f32 %v1264_v37, %v3266_v30  ;;  %v1260_v14 = vmul.f32 %v3379_v62, %v1210_v10  ;;  %v1267_v38 = vmul.f32 %v3379_v62, %v1217_v57  ;;  %v992_v48 = vpop.f32.mrb[36].mxu1 }
 0x2e2   : > { %v3399_v16 = vadd.f32 %v1259_v27, %v3270_v21  ;;  %v3402_v44 = vadd.f32 %v1258_v63, %v3273_v26  ;;  %v1261_v56 = vmul.f32 %v3379_v62, %v1211_v1  ;;  %v1164_v45 = vmax.f32 %v992_v48, 0.0  ;;  %v994_v32 = vpop.f32.mrb[37].mxu1  ;;  %v2622_v53 = vpop.f32.mrb[52].mxu0 }
 0x2e3   : > { %v3406_v50 = vadd.f32 %v1260_v14, %v3276_v28  ;;  %v3409_v37 = vadd.f32 %v1267_v38, %v3279_v11  ;;  %v1165_v30 = vmax.f32 %v994_v32, 0.0  ;;  %v1178_v10 = vmax.f32 %v2622_v53, 0.0  ;;  %v996_v35 = vpop.f32.mrb[38].mxu1  ;;  %v1111_v51 = vpop.f32.mrb[53].mxu0 }
 0x2e4   : > { %v3412_v21 = vadd.f32 %v1261_v56, %v3282_v25  ;;  %v1212_v26 = vmin.f32 %v1164_v45, 1.0  ;;  %v1167_v40 = vmax.f32 %v996_v35, 0.0  ;;  %v1172_v58 = vmax.f32 %v1111_v51, 0.0  ;;  %v998_v59 = vpop.f32.mrb[39].mxu1  ;;  %v2623_v57 = vpop.f32.mrb[54].mxu0 }
 0x2e5   : > { %v1213_v27 = vmin.f32 %v1165_v30, 1.0  ;;  %v1226_v63 = vmin.f32 %v1178_v10, 1.0  ;;  %v1168_v1 = vmax.f32 %v998_v59, 0.0  ;;  %v1181_v28 = vmax.f32 %v2623_v57, 0.0  ;;  %v1114_v14 = vpop.f32.mrb[55].mxu0 }
 0x2e6   : > { %v1262_v11 = vmul.f32 %v3379_v62, %v1212_v26  ;;  %v1215_v38 = vmin.f32 %v1167_v40, 1.0  ;;  %v1220_v48 = vmin.f32 %v1172_v58, 1.0  ;;  %v1175_v32 = vmax.f32 %v1114_v14, 0.0 }
 0x2e7   : > { %v1263_v53 = vmul.f32 %v3379_v62, %v1213_v27  ;;  %v1276_v25 = vmul.f32 %v3379_v62, %v1226_v63  ;;  %v1216_v56 = vmin.f32 %v1168_v1, 1.0  ;;  %v1229_v45 = vmin.f32 %v1181_v28, 1.0 }
 0x2e8   : > { %v3418_v35 = vadd.f32 %v1262_v11, %v3285_v23  ;;  %v1265_v30 = vmul.f32 %v3379_v62, %v1215_v38  ;;  %v1270_v10 = vmul.f32 %v3379_v62, %v1220_v48  ;;  %v1223_v51 = vmin.f32 %v1175_v32, 1.0 }
 0x2e9   : > { %v3423_v59 = vadd.f32 %v1263_v53, %v3288_v55  ;;  %v3426_v26 = vadd.f32 %v1276_v25, %v3291_v18  ;;  %v1266_v40 = vmul.f32 %v3379_v62, %v1216_v56  ;;  %v1279_v58 = vmul.f32 %v3379_v62, %v1229_v45  ;;  %v1002_v57 = vpop.f32.mrb[40].mxu1 }
 0x2ea   : > { %v3431_v27 = vadd.f32 %v1265_v30, %v3294_v0  ;;  %v3434_v23 = vadd.f32 %v1270_v10, %v3297_v2  ;;  %v1273_v63 = vmul.f32 %v3379_v62, %v1223_v51  ;;  %v1170_v1 = vmax.f32 %v1002_v57, 0.0  ;;  %v1004_v28 = vpop.f32.mrb[41].mxu1  ;;  %v2626_v55 = vpop.f32.mrb[56].mxu0 }
 0x2eb   : > { %v3438_v14 = vadd.f32 %v1266_v40, %v3300_v3  ;;  %v3441_v18 = vadd.f32 %v1279_v58, %v3303_v4  ;;  %v1171_v11 = vmax.f32 %v1004_v28, 0.0  ;;  %v1190_v38 = vmax.f32 %v2626_v55, 0.0  ;;  %v1006_v48 = vpop.f32.mrb[42].mxu1  ;;  %v1127_v32 = vpop.f32.mrb[57].mxu0 }
 0x2ec   : > { %v3444_v0 = vadd.f32 %v1273_v63, %v3306_v5  ;;  %v1218_v2 = vmin.f32 %v1170_v1, 1.0  ;;  %v1173_v53 = vmax.f32 %v1006_v48, 0.0  ;;  %v1184_v25 = vmax.f32 %v1127_v32, 0.0  ;;  %v1008_v56 = vpop.f32.mrb[43].mxu1  ;;  %v2627_v45 = vpop.f32.mrb[58].mxu0 }
 0x2ed   : > { %v1219_v30 = vmin.f32 %v1171_v11, 1.0  ;;  %v1238_v10 = vmin.f32 %v1190_v38, 1.0  ;;  %v1174_v51 = vmax.f32 %v1008_v56, 0.0  ;;  %v1193_v3 = vmax.f32 %v2627_v45, 0.0  ;;  %v1130_v40 = vpop.f32.mrb[59].mxu0 }
 0x2ee   : > { %v1268_v4 = vmul.f32 %v3379_v62, %v1218_v2  ;;  %v1221_v58 = vmin.f32 %v1173_v53, 1.0  ;;  %v1232_v57 = vmin.f32 %v1184_v25, 1.0  ;;  %v1187_v28 = vmax.f32 %v1130_v40, 0.0 }
 0x2ef   : > { %v1269_v55 = vmul.f32 %v3379_v62, %v1219_v30  ;;  %v1288_v5 = vmul.f32 %v3379_v62, %v1238_v10  ;;  %v1222_v63 = vmin.f32 %v1174_v51, 1.0  ;;  %v1241_v1 = vmin.f32 %v1193_v3, 1.0 }
 0x2f0   : > { %v3450_v48 = vadd.f32 %v1268_v4, %v3323_v60  ;;  %v1271_v11 = vmul.f32 %v3379_v62, %v1221_v58  ;;  %v1282_v38 = vmul.f32 %v3379_v62, %v1232_v57  ;;  %v1235_v32 = vmin.f32 %v1187_v28, 1.0 }
 0x2f1   : > { %v3455_v56 = vadd.f32 %v1269_v55, %v3329_v49  ;;  %v3458_v2 = vadd.f32 %v1288_v5, %v3332_v31  ;;  %v1272_v53 = vmul.f32 %v3379_v62, %v1222_v63  ;;  %v1291_v25 = vmul.f32 %v3379_v62, %v1241_v1  ;;  %v1012_v45 = vpop.f32.mrb[44].mxu1 }
 0x2f2   : > { %v3463_v30 = vadd.f32 %v1271_v11, %v3336_v29  ;;  %v3466_v60 = vadd.f32 %v1282_v38, %v3339_v52  ;;  %v1285_v10 = vmul.f32 %v3379_v62, %v1235_v32  ;;  %v1176_v51 = vmax.f32 %v1012_v45, 0.0  ;;  %v1014_v3 = vpop.f32.mrb[45].mxu1  ;;  %v2630_v49 = vpop.f32.mrb[60].mxu0 }
 0x2f3   : > { %v3470_v40 = vadd.f32 %v1272_v53, %v3342_v24  ;;  %v3473_v31 = vadd.f32 %v1291_v25, %v3345_v12  ;;  %v1177_v4 = vmax.f32 %v1014_v3, 0.0  ;;  %v1202_v58 = vmax.f32 %v2630_v49, 0.0  ;;  %v1016_v57 = vpop.f32.mrb[46].mxu1  ;;  %v1143_v28 = vpop.f32.mrb[61].mxu0 }
 0x2f4   : > { %v3476_v29 = vadd.f32 %v1285_v10, %v3348_v54  ;;  %v1224_v52 = vmin.f32 %v1176_v51, 1.0  ;;  %v1179_v55 = vmax.f32 %v1016_v57, 0.0  ;;  %v1196_v5 = vmax.f32 %v1143_v28, 0.0  ;;  %v1018_v63 = vpop.f32.mrb[47].mxu1  ;;  %v2631_v1 = vpop.f32.mrb[62].mxu0 }
 0x2f5   : > { %v1225_v11 = vmin.f32 %v1177_v4, 1.0  ;;  %v1250_v38 = vmin.f32 %v1202_v58, 1.0  ;;  %v1180_v32 = vmax.f32 %v1018_v63, 0.0  ;;  %v1205_v24 = vmax.f32 %v2631_v1, 0.0  ;;  %v1146_v53 = vpop.f32.mrb[63].mxu0 }
 0x2f6   : > { %v1274_v12 = vmul.f32 %v3379_v62, %v1224_v52  ;;  %v1227_v25 = vmin.f32 %v1179_v55, 1.0  ;;  %v1244_v45 = vmin.f32 %v1196_v5, 1.0  ;;  %v1199_v3 = vmax.f32 %v1146_v53, 0.0 }
 0x2f7   : > { %v1275_v49 = vmul.f32 %v3379_v62, %v1225_v11  ;;  %v1300_v54 = vmul.f32 %v3379_v62, %v1250_v38  ;;  %v1228_v10 = vmin.f32 %v1180_v32, 1.0  ;;  %v1253_v51 = vmin.f32 %v1205_v24, 1.0 }
 0x2f8   : > { %v3482_v57 = vadd.f32 %v1274_v12, %v3351_v6  ;;  %v1277_v4 = vmul.f32 %v3379_v62, %v1227_v25  ;;  %v1294_v58 = vmul.f32 %v3379_v62, %v1244_v45  ;;  %v1247_v28 = vmin.f32 %v1199_v3, 1.0 }
 0x2f9   : > { %v3487_v63 = vadd.f32 %v1275_v49, %v3354_v7  ;;  %v3490_v52 = vadd.f32 %v1300_v54, %v3357_v8  ;;  %v1278_v55 = vmul.f32 %v3379_v62, %v1228_v10  ;;  %v1303_v5 = vmul.f32 %v3379_v62, %v1253_v51  ;;  %v1022_v1 = vpop.f32.mrb[48].mxu1 }
 0x2fa   : > { %v3495_v11 = vadd.f32 %v1277_v4, %v3360_v17  ;;  %v3498_v6 = vadd.f32 %v1294_v58, %v3363_v9  ;;  %v1297_v38 = vmul.f32 %v3379_v62, %v1247_v28  ;;  %v1182_v32 = vmax.f32 %v1022_v1, 0.0  ;;  %v1024_v24 = vpop.f32.mrb[49].mxu1  ;;  %v2636_v7 = vpop.f32.mrb[64].mxu0 }
 0x2fb   : > { %v3989_v53 = vmax.f32 %v3986_v43, 0.0  ;;  %v3504_v12 = vadd.f32 %v1278_v55, %v3366_v19  ;;  %v3507_v25 = vadd.f32 %v1303_v5, %v3369_v39  ;;  %v1183_v45 = vmax.f32 %v1024_v24, 0.0  ;;  %v1026_v17 = vpop.f32.mrb[50].mxu1  ;;  %v1395_v3 = vpop.f32.mrb[65].mxu0 }
 0x2fc   : > { %v3990_v9 = vmax.f32 %v3987_v61, 0.0  ;;  %v3512_v54 = vadd.f32 %v1297_v38, %v3372_v41  ;;  %v1230_v10 = vmin.f32 %v1182_v32, 1.0  ;;  %v1185_v51 = vmax.f32 %v1026_v17, 0.0  ;;  %v1028_v4 = vpop.f32.mrb[51].mxu1  ;;  %v2637_v43 = vpop.f32.mrb[66].mxu0 }
 0x2fd   : > { %v737_v8 = vmin.f32 %v3989_v53, 1.0  ;;  %v3991_v58 = vmax.f32 %v3988_v47, 0.0  ;;  %v1231_v28 = vmin.f32 %v1183_v45, 1.0  ;;  %v1186_v55 = vmax.f32 %v1028_v4, 0.0  ;;  %v1398_v5 = vpop.f32.mrb[67].mxu0 }
 0x2fe   : > { %v739_v49 = vmin.f32 %v3990_v9, 1.0  ;;  %v1459_v39 = vpack.c.bf16 %v2637_v43, %v2636_v7  ;;  %v786_v1 = vmul.f32 %v3168_v22, %v3374_v42  ;;  %v1280_v61 = vmul.f32 %v3379_v62, %v1230_v10 }
 0x2ff   : > { %v740_v19 = vmin.f32 %v3991_v58, 1.0  ;;  %v1233_v24 = vmin.f32 %v1185_v51, 1.0  ;;  %v1458_v53 = vpack.c.bf16 %v1398_v5, %v1395_v3  ;;  %v787_v41 = vmul.f32 %v3168_v22, %v737_v8 }
 0x300   : > { %v1281_v38 = vmul.f32 %v3379_v62, %v1231_v28  ;;  %v1234_v32 = vmin.f32 %v1186_v55, 1.0  ;;  %v789_v17 = vmul.f32 %v3168_v22, %v739_v49  ;;  %v3522_v47 = vadd.f32 %v1280_v61, %v786_v1 }
 0x301   : > { %v1283_v45 = vmul.f32 %v3379_v62, %v1233_v24  ;;  %2420 = vmatmul.mubr.msk.bf16.vlgmr.msra.gmra.mrb[64].mxu1 %vm280_vm0, %v1458_v53  ;;  %2652 = vmatprep.mubr.msk.bf16.mxu0 %vm280_vm0, %v1458_v53  ;;  %v790_v42 = vmul.f32 %v3168_v22, %v740_v19  ;;  %v1032_v8 = vpop.f32.mrb[52].mxu1 }
 0x302   : > { %v3528_v7 = vadd.f32 %v1281_v38, %v787_v41  ;;  %v1284_v3 = vmul.f32 %v3379_v62, %v1234_v32  ;;  %2653 = vmatmul.mubr.msk.bf16.vlgmr.msra.gmra.mrb[80].mxu0 %vm280_vm0, %v1459_v39  ;;  %1532 = vmatprep.mubr.bf16.mxu1 %v3978_v33  ;;  %v1188_v49 = vmax.f32 %v1032_v8, 0.0  ;;  %v1034_v10 = vpop.f32.mrb[53].mxu1  ;;  %v2640_v51 = vpop.f32.mrb[68].mxu0 }
 0x303   : > { %v3533_v9 = vadd.f32 %v1283_v45, %v789_v17  ;;  %v1189_v43 = vmax.f32 %v1034_v10, 0.0  ;;  %v1036_v58 = vpop.f32.mrb[54].mxu1  ;;  %v1411_v28 = vpop.f32.mrb[69].mxu0 }
 0x304   : > { %v3535_v4 = vadd.f32 %v1284_v3, %v790_v42  ;;  %v1236_v22 = vmin.f32 %v1188_v49, 1.0  ;;  %v1191_v19 = vmax.f32 %v1036_v58, 0.0  ;;  %v1038_v55 = vpop.f32.mrb[55].mxu1  ;;  %v2641_v5 = vpop.f32.mrb[70].mxu0  ;;  %v3994_v42 = vld [vmem:[#allocation14_spill] sm:$0xff]  ;;  %v3996_v49 = vld [vmem:[#allocation15_spill] sm:$0xff] }
 0x305   : > { %3992 = vst [vmem:[#allocation9_spill] sm:$0xff] %v3533_v9  ;;  %v1237_v1 = vmin.f32 %v1189_v43, 1.0  ;;  %v1192_v61 = vmax.f32 %v1038_v55, 0.0  ;;  %v3537_v24 = vpack.c.bf16 %v2641_v5, %v2640_v51  ;;  %v1414_v53 = vpop.f32.mrb[71].mxu0  ;;  %v3998_v58 = vld [vmem:[#allocation16_spill] sm:$0xff] }
 0x306   : > { %3993 = vst [vmem:[#allocation10_spill] sm:$0xff] %v3535_v4  ;;  %v1286_v41 = vmul.f32 %v3379_v62, %v1236_v22  ;;  %v1239_v38 = vmin.f32 %v1191_v19, 1.0  ;;  %v1460_v32 = vpack.c.bf16 %v1414_v53, %v1411_v28 }
 0x307   : > { %v1287_v17 = vmul.f32 %v3379_v62, %v1237_v1  ;;  %v1240_v45 = vmin.f32 %v1192_v61, 1.0 }
 0x308   : > { %v3542_v3 = vadd.f32 %v1286_v41, %v3994_v42  ;;  %v1289_v8 = vmul.f32 %v3379_v62, %v1239_v38  ;;  %2656 = vmatprep.mubr.msk.bf16.mxu0 %vm280_vm0, %v1460_v32 }
 0x309   : > { %2421 = vmatmul.mubr.msk.bf16.gmra.mrb[68].mxu1 %vm280_vm0, %v1459_v39  ;;  %v3548_v10 = vadd.f32 %v1287_v17, %v3996_v49  ;;  %v1290_v51 = vmul.f32 %v3379_v62, %v1240_v45  ;;  %v1042_v43 = vpop.f32.mrb[56].mxu1  ;;  %v4000_v39 = vld [vmem:[#allocation17_spill] sm:$0xff] }
 0x30a   : > { %3995 = vst [vmem:[#allocation11_spill] sm:$0xff] %v3542_v3  ;;  %2657 = vmatmul.mubr.msk.bf16.gmra.mrb[84].mxu0 %vm280_vm0, %v3537_v24  ;;  %1542 = vmatprep.mubr.bf16.mxu1 %v3978_v33  ;;  %v3555_v28 = vadd.f32 %v1289_v8, %v3998_v58  ;;  %v1194_v22 = vmax.f32 %v1042_v43, 0.0  ;;  %v1044_v19 = vpop.f32.mrb[57].mxu1  ;;  %v2644_v55 = vpop.f32.mrb[72].mxu0 }
 0x30b   : > { %3997 = vst [vmem:[#allocation12_spill] sm:$0xff] %v3548_v10  ;;  %v3558_v5 = vadd.f32 %v1290_v51, %v4000_v39  ;;  %v1195_v1 = vmax.f32 %v1044_v19, 0.0  ;;  %v1046_v61 = vpop.f32.mrb[58].mxu1  ;;  %v1427_v53 = vpop.f32.mrb[73].mxu0  ;;  %v4002_v51 = vld [vmem:[#allocation18_spill] sm:$0xff] }
 0x30c   : > { %3999 = vst [vmem:[#allocation13_spill] sm:$0xff] %v3555_v28  ;;  %v1242_v41 = vmin.f32 %v1194_v22, 1.0  ;;  %v1197_v38 = vmax.f32 %v1046_v61, 0.0  ;;  %v1048_v17 = vpop.f32.mrb[59].mxu1  ;;  %v2645_v45 = vpop.f32.mrb[74].mxu0  ;;  %v4004_v22 = vld [vmem:[#allocation19_spill] sm:$0xff] }
 0x30d   : > { %4001 = vst [vmem:[#allocation14_spill] sm:$0xff] %v3558_v5  ;;  %v1243_v42 = vmin.f32 %v1195_v1, 1.0  ;;  %v1198_v49 = vmax.f32 %v1048_v17, 0.0  ;;  %v1463_v10 = vpack.c.bf16 %v2645_v45, %v2644_v55  ;;  %v1430_v3 = vpop.f32.mrb[75].mxu0  ;;  %v4008_v45 = vld [vmem:[#allocation21_spill] sm:$0xff] }
 0x30e   : > { %v1292_v8 = vmul.f32 %v3379_v62, %v1242_v41  ;;  %v1245_v58 = vmin.f32 %v1197_v38, 1.0  ;;  %v1462_v43 = vpack.c.bf16 %v1430_v3, %v1427_v53  ;;  %v4006_v3 = vld [vmem:[#allocation20_spill] sm:$0xff] }
 0x30f   : > { %v1293_v28 = vmul.f32 %v3379_v62, %v1243_v42  ;;  %v1246_v4 = vmin.f32 %v1198_v49, 1.0 }
 0x310   : > { %v3563_v39 = vadd.f32 %v1292_v8, %v4002_v51  ;;  %v1295_v19 = vmul.f32 %v3379_v62, %v1245_v58  ;;  %2660 = vmatprep.mubr.msk.bf16.mxu0 %vm280_vm0, %v1462_v43 }
 0x311   : > { %2422 = vmatmul.mubr.msk.bf16.gmra.mrb[72].mxu1 %vm280_vm0, %v1460_v32  ;;  %v3569_v1 = vadd.f32 %v1293_v28, %v4004_v22  ;;  %v1296_v55 = vmul.f32 %v3379_v62, %v1246_v4  ;;  %v1052_v61 = vpop.f32.mrb[60].mxu1 }
 0x312   : > { %4003 = vst [vmem:[#allocation15_spill] sm:$0xff] %v3563_v39  ;;  %2661 = vmatmul.mubr.msk.bf16.gmra.mrb[88].mxu0 %vm280_vm0, %v1463_v10  ;;  %1552 = vmatprep.mubr.bf16.mxu1 %v3978_v33  ;;  %v3575_v53 = vadd.f32 %v1295_v19, %v4006_v3  ;;  %v1200_v41 = vmax.f32 %v1052_v61, 0.0  ;;  %v1054_v38 = vpop.f32.mrb[61].mxu1  ;;  %v2648_v17 = vpop.f32.mrb[76].mxu0 }
 0x313   : > { %4005 = vst [vmem:[#allocation16_spill] sm:$0xff] %v3569_v1  ;;  %v3578_v32 = vadd.f32 %v1296_v55, %v4008_v45  ;;  %v1201_v42 = vmax.f32 %v1054_v38, 0.0  ;;  %v1056_v49 = vpop.f32.mrb[62].mxu1  ;;  %v1443_v28 = vpop.f32.mrb[77].mxu0 }
 0x314   : > { %4007 = vst [vmem:[#allocation17_spill] sm:$0xff] %v3575_v53  ;;  %v1248_v8 = vmin.f32 %v1200_v41, 1.0  ;;  %v1203_v58 = vmax.f32 %v1056_v49, 0.0  ;;  %v1058_v4 = vpop.f32.mrb[63].mxu1  ;;  %v2649_v51 = vpop.f32.mrb[78].mxu0  ;;  %v3610_v49 = vstv %s1894_s22 }
 0x315   : > { %v1249_v22 = vmin.f32 %v1201_v42, 1.0  ;;  %v1204_v1 = vmax.f32 %v1058_v4, 0.0  ;;  %v1465_v39 = vpack.c.bf16 %v2649_v51, %v2648_v17  ;;  %v1446_v5 = vpop.f32.mrb[79].mxu0 }
 0x316   : > { %v1298_v19 = vmul.f32 %v3379_v62, %v1248_v8  ;;  %v1251_v3 = vmin.f32 %v1203_v58, 1.0  ;;  %v1464_v61 = vpack.c.bf16 %v1446_v5, %v1443_v28 }
 0x317   : > { %v1299_v53 = vmul.f32 %v3379_v62, %v1249_v22  ;;  %v1252_v9 = vmin.f32 %v1204_v1, 1.0 }
 0x318   : > { %v3583_v55 = vadd.f32 %v1298_v19, %v3203_v34  ;;  %v1301_v38 = vmul.f32 %v3379_v62, %v1251_v3  ;;  %2664 = vmatprep.mubr.msk.bf16.mxu0 %vm280_vm0, %v1464_v61  ;;  %v4011_v34 = vld [vmem:[#allocation22_spill] sm:$0xff] }
 0x319   : > { %2423 = vmatmul.mubr.msk.bf16.gmra.mrb[76].mxu1 %vm280_vm0, %v3537_v24  ;;  %v3590_v41 = vadd.f32 %v1299_v53, %v3206_v36  ;;  %v1302_v17 = vmul.f32 %v3379_v62, %v1252_v9  ;;  %v3608_v24 = vstv %s2436_s21  ;;  %s2778_s21 = sshll.u32 %s2874_s20, 4  ;;  %s2779_s21 = int_to_ptr.vmem [resolvable:$false] %s2778_s21 }
 0x31a   : > { %2665 = vmatmul.mubr.msk.bf16.gmra.mrb[92].mxu0 %vm280_vm0, %v1465_v39  ;;  %1562 = vmatprep.mubr.bf16.mxu1 %v3978_v33  ;;  %v3596_v5 = vadd.f32 %v1301_v38, %v3209_v20  ;;  %s2780_s22 = scalar_lea.vmem %s2779_s21, 6144  ;;  %p2781_p9 = scmp.lt.s32.totalorder %s3894_s27, %s2779_s21 }
 0x31b   : > { %4009 = vst [vmem:[#allocation18_spill] sm:$0xff] %v3590_v41  ;;  %v3599_v1 = vadd.f32 %v1302_v17, %v4011_v34  ;;  %p2782_p10 = scmp.lt.s32.totalorder %s2780_s22, %s2774_s19 }
 0x31c   : > { %4010 = vst [vmem:[#allocation19_spill] sm:$0xff] %v3596_v5 }
 0x31d   : > { %4012 = vst [vmem:[#allocation20_spill] sm:$0xff] %v3599_v1  ;;  %p2783_p11 = por %p2782_p10, %p2781_p9 }
 0x31f   : > { %p2784_p12 = pnand %p2783_p11, %p2777_p7 }
 0x321   : > { %2424 = vmatmul.mubr.msk.bf16.gmra.mrb[80].mxu1 %vm280_vm0, %v1462_v43 }
 0x322   : > { %1572 = vmatprep.mubr.bf16.mxu1 %v3978_v33 }
 0x329   : > { %2425 = vmatmul.mubr.msk.bf16.gmra.mrb[84].mxu1 %vm280_vm0, %v1463_v10 }
 0x32a   : > { %1582 = vmatprep.mubr.bf16.mxu1 %v3978_v33 }
 0x331   : > { %2426 = vmatmul.mubr.msk.bf16.gmra.mrb[88].mxu1 %vm280_vm0, %v1464_v61 }
 0x332   : > { %1592 = vmatprep.mubr.bf16.mxu1 %v3978_v33 }
 0x339   : > { %2427 = vmatmul.mubr.msk.bf16.gmra.mrb[92].mxu1 %vm280_vm0, %v1465_v39 }
 0x3d4   : > { %v1524_v36 = vpop.f32.mrb[64].mxu1 }
 0x3d5   : > { %v1700_v20 = vmax.f32 %v1524_v36, 0.0  ;;  %v1526_v62 = vpop.f32.mrb[65].mxu1  ;;  %v2654_v9 = vpop.f32.mrb[80].mxu0 }
 0x3d6   : > { %v1701_v43 = vmax.f32 %v1526_v62, 0.0  ;;  %v1708_v53 = vmax.f32 %v2654_v9, 0.0  ;;  %v1528_v45 = vpop.f32.mrb[66].mxu1  ;;  %v1637_v10 = vpop.f32.mrb[81].mxu0 }
 0x3d7   : > { %v1748_v42 = vmin.f32 %v1700_v20, 1.0  ;;  %v1703_v28 = vmax.f32 %v1528_v45, 0.0  ;;  %v1702_v8 = vmax.f32 %v1637_v10, 0.0  ;;  %v1530_v33 = vpop.f32.mrb[67].mxu1  ;;  %v2655_v58 = vpop.f32.mrb[82].mxu0 }
 0x3d8   : > { %v1749_v39 = vmin.f32 %v1701_v43, 1.0  ;;  %v1756_v4 = vmin.f32 %v1708_v53, 1.0  ;;  %v1704_v51 = vmax.f32 %v1530_v33, 0.0  ;;  %v1711_v22 = vmax.f32 %v2655_v58, 0.0  ;;  %v1640_v19 = vpop.f32.mrb[83].mxu0 }
 0x3d9   : > { %v1798_v3 = vmul.f32 %v3608_v24, %v1748_v42  ;;  %v1751_v61 = vmin.f32 %v1703_v28, 1.0  ;;  %v1750_v38 = vmin.f32 %v1702_v8, 1.0  ;;  %v1705_v17 = vmax.f32 %v1640_v19, 0.0 }
 0x3da   : > { %v1799_v34 = vmul.f32 %v3608_v24, %v1749_v39  ;;  %v1806_v36 = vmul.f32 %v3608_v24, %v1756_v4  ;;  %v1752_v20 = vmin.f32 %v1704_v51, 1.0  ;;  %v1759_v62 = vmin.f32 %v1711_v22, 1.0 }
 0x3db   : > { %v1846_v9 = vadd.f32 %v1798_v3, %v3386_v46  ;;  %v1801_v43 = vmul.f32 %v3608_v24, %v1751_v61  ;;  %v1800_v53 = vmul.f32 %v3608_v24, %v1750_v38  ;;  %v1753_v45 = vmin.f32 %v1705_v17, 1.0 }
 0x3dc   : > { %v1847_v10 = vadd.f32 %v1799_v34, %v3391_v15  ;;  %v1854_v42 = vadd.f32 %v1806_v36, %v3394_v13  ;;  %v1802_v28 = vmul.f32 %v3608_v24, %v1752_v20  ;;  %v1809_v8 = vmul.f32 %v3608_v24, %v1759_v62  ;;  %v1534_v33 = vpop.f32.mrb[68].mxu1 }
 0x3dd   : > { %v1896_v58 = vadd.f32 %v3610_v49, %v1846_v9  ;;  %v1849_v46 = vadd.f32 %v1801_v43, %v3399_v16  ;;  %v1848_v39 = vadd.f32 %v1800_v53, %v3402_v44  ;;  %v1803_v4 = vmul.f32 %v3608_v24, %v1753_v45  ;;  %v1536_v51 = vpop.f32.mrb[69].mxu1  ;;  %v2658_v22 = vpop.f32.mrb[84].mxu0 }
 0x3de   : > { %v1897_v15 = vadd.f32 %v3610_v49, %v1847_v10  ;;  %v1904_v13 = vadd.f32 %v3610_v49, %v1854_v42  ;;  %v1850_v19 = vadd.f32 %v1802_v28, %v3406_v50  ;;  %v1857_v3 = vadd.f32 %v1809_v8, %v3409_v37  ;;  %v1538_v61 = vpop.f32.mrb[70].mxu1  ;;  %v1653_v38 = vpop.f32.mrb[85].mxu0 }
 0x3df   : > { %v1944_v17 = vmax.f32 %v1896_v58, 0.0  ;;  %v1899_v16 = vadd.f32 %v3610_v49, %v1849_v46  ;;  %v1898_v44 = vadd.f32 %v3610_v49, %v1848_v39  ;;  %v1851_v34 = vadd.f32 %v1803_v4, %v3412_v21  ;;  %v1540_v36 = vpop.f32.mrb[71].mxu1  ;;  %v2659_v20 = vpop.f32.mrb[86].mxu0 }
 0x3e0   : > { %v1945_v62 = vmax.f32 %v1897_v15, 0.0  ;;  %v1952_v9 = vmax.f32 %v1904_v13, 0.0  ;;  %v1900_v50 = vadd.f32 %v3610_v49, %v1850_v19  ;;  %v1907_v37 = vadd.f32 %v3610_v49, %v1857_v3  ;;  %v1656_v43 = vpop.f32.mrb[87].mxu0 }
 0x3e1   : > { %v1992_v53 = vmin.f32 %v1944_v17, 1.0  ;;  %v1947_v45 = vmax.f32 %v1899_v16, 0.0  ;;  %v1946_v10 = vmax.f32 %v1898_v44, 0.0  ;;  %v1901_v42 = vadd.f32 %v3610_v49, %v1851_v34 }
 0x3e2   : > { %v1993_v28 = vmin.f32 %v1945_v62, 1.0  ;;  %v2000_v8 = vmin.f32 %v1952_v9, 1.0  ;;  %v1948_v58 = vmax.f32 %v1900_v50, 0.0  ;;  %v1955_v46 = vmax.f32 %v1907_v37, 0.0 }
 0x3e3   : > { %v1995_v21 = vmin.f32 %v1947_v45, 1.0  ;;  %v1994_v39 = vmin.f32 %v1946_v10, 1.0  ;;  %v1949_v4 = vmax.f32 %v1901_v42, 0.0  ;;  %v1706_v15 = vmax.f32 %v1534_v33, 0.0 }
 0x3e4   : > { %v2474_v13 = vpack.c.bf16 %v1993_v28, %v1992_v53  ;;  %v2479_v1 = vpack.c.bf16 %v2000_v8, %v2000_v8  ;;  %v1996_v19 = vmin.f32 %v1948_v58, 1.0  ;;  %v2003_v5 = vmin.f32 %v1955_v46, 1.0  ;;  %v3641_v3 = vpop.f32.mrb[72].mxu1 }
 0x3e5   : > { %v2475_v17 = vpack.c.bf16 %v1994_v39, %v1994_v39  ;;  %v1997_v16 = vmin.f32 %v1949_v4, 1.0  ;;  %v1754_v44 = vmin.f32 %v1706_v15, 1.0  ;;  %v1707_v41 = vmax.f32 %v1536_v51, 0.0  ;;  %v3643_v34 = vpop.f32.mrb[73].mxu1  ;;  %v3645_v62 = vpop.f32.mrb[88].mxu0 }
 0x3e6   : > { %2200 = vst [vmem:[%s3648_s6] sm:$0xff] %v2474_v13  ;;  %2205 = vst [vmem:[%s3648_s6 + $0x20] sm:$0xf] %v2479_v1  ;;  %v2476_v33 = vpack.c.bf16 %v1996_v19, %v1995_v21  ;;  %v2481_v9 = vpack.c.bf16 %v2003_v5, %v2003_v5  ;;  %v1720_v50 = vmax.f32 %v2658_v22, 0.0  ;;  %v1709_v37 = vmax.f32 %v1538_v61, 0.0  ;;  %v3652_v53 = vpop.f32.mrb[74].mxu1  ;;  %v3654_v51 = vpop.f32.mrb[89].mxu0 }
 0x3e7   : > { %2201 = vst [vmem:[%s3648_s6 + $0x8] sm:$0xf] %v2475_v17  ;;  %v2477_v45 = vpack.c.bf16 %v1997_v16, %v1997_v16  ;;  %v1804_v10 = vmul.f32 %v3608_v24, %v1754_v44  ;;  %v1755_v42 = vmin.f32 %v1707_v41, 1.0  ;;  %v1714_v28 = vmax.f32 %v1653_v38, 0.0  ;;  %v3658_v8 = vpop.f32.mrb[75].mxu1  ;;  %v3660_v58 = vpop.f32.mrb[90].mxu0 }
 0x3e8   : > { %2202 = vst [vmem:[%s3648_s6 + $0xc] sm:$0xff] %v2476_v33  ;;  %2207 = vst [vmem:[%s3648_s6 + $0x2c] sm:$0xf] %v2481_v9  ;;  %v1768_v5 = vmin.f32 %v1720_v50, 1.0  ;;  %v1757_v1 = vmin.f32 %v1709_v37, 1.0  ;;  %v1710_v22 = vmax.f32 %v1540_v36, 0.0 }
 0x3e9   : > { %v1723_v61 = vmax.f32 %v2659_v20, 0.0  ;;  %v3664_v46 = vpop.f32.mrb[91].mxu0  ;;  %2203 = vst [vmem:[%s3648_s6 + $0x14] sm:$0xf] %v2477_v45  ;;  %v1852_v21 = vadd.f32 %v1804_v10, %v3418_v35  ;;  %v1805_v39 = vmul.f32 %v3608_v24, %v1755_v42  ;;  %v1762_v4 = vmin.f32 %v1714_v28, 1.0 }
 0x3ea   : > { %v1717_v41 = vmax.f32 %v1656_v43, 0.0  ;;  %v1818_v38 = vmul.f32 %v3608_v24, %v1768_v5  ;;  %v1807_v15 = vmul.f32 %v3608_v24, %v1757_v1  ;;  %v1758_v13 = vmin.f32 %v1710_v22, 1.0 }
 0x3eb   : > { %v1771_v19 = vmin.f32 %v1723_v61, 1.0  ;;  %v1902_v17 = vadd.f32 %v3610_v49, %v1852_v21  ;;  %v1853_v36 = vadd.f32 %v1805_v39, %v3423_v59  ;;  %v1812_v20 = vmul.f32 %v3608_v24, %v1762_v4 }
 0x3ec   : > { %v1765_v16 = vmin.f32 %v1717_v41, 1.0  ;;  %v1866_v44 = vadd.f32 %v1818_v38, %v3426_v26  ;;  %v1855_v35 = vadd.f32 %v1807_v15, %v3431_v27  ;;  %v1808_v33 = vmul.f32 %v3608_v24, %v1758_v13  ;;  %v3678_v9 = vpop.f32.mrb[76].mxu1 }
 0x3ed   : > { %v1821_v43 = vmul.f32 %v3608_v24, %v1771_v19  ;;  %v1950_v50 = vmax.f32 %v1902_v17, 0.0  ;;  %v1903_v37 = vadd.f32 %v3610_v49, %v1853_v36  ;;  %v1860_v45 = vadd.f32 %v1812_v20, %v3434_v23  ;;  %v3683_v10 = vpop.f32.mrb[77].mxu1  ;;  %v3685_v42 = vpop.f32.mrb[92].mxu0 }
 0x3ee   : > { %v1815_v59 = vmul.f32 %v3608_v24, %v1765_v16  ;;  %v1916_v26 = vadd.f32 %v3610_v49, %v1866_v44  ;;  %v1905_v27 = vadd.f32 %v3610_v49, %v1855_v35  ;;  %v1856_v28 = vadd.f32 %v1808_v33, %v3438_v14  ;;  %v3691_v1 = vpop.f32.mrb[78].mxu1  ;;  %v3693_v22 = vpop.f32.mrb[93].mxu0 }
 0x3ef   : > { %v1869_v5 = vadd.f32 %v1821_v43, %v3441_v18  ;;  %v1998_v61 = vmin.f32 %v1950_v50, 1.0  ;;  %v1951_v23 = vmax.f32 %v1903_v37, 0.0  ;;  %v1910_v21 = vadd.f32 %v3610_v49, %v1860_v45  ;;  %v3697_v4 = vpop.f32.mrb[79].mxu1  ;;  %v3699_v41 = vpop.f32.mrb[94].mxu0 }
 0x3f0   : > { %v1863_v39 = vadd.f32 %v1815_v59, %v3444_v0  ;;  %v1964_v38 = vmax.f32 %v1916_v26, 0.0  ;;  %v1953_v15 = vmax.f32 %v1905_v27, 0.0  ;;  %v1906_v14 = vadd.f32 %v3610_v49, %v1856_v28  ;;  %v3703_v13 = vpop.f32.mrb[95].mxu0 }
 0x3f1   : > { %v1919_v18 = vadd.f32 %v3610_v49, %v1869_v5  ;;  %v1999_v19 = vmin.f32 %v1951_v23, 1.0  ;;  %v1958_v17 = vmax.f32 %v1910_v21, 0.0  ;;  %v1712_v20 = vmax.f32 %v3641_v3, 0.0 }
 0x3f2   : > { %v1913_v36 = vadd.f32 %v3610_v49, %v1863_v39  ;;  %v2012_v0 = vmin.f32 %v1964_v38, 1.0  ;;  %v2001_v16 = vmin.f32 %v1953_v15, 1.0  ;;  %v1954_v44 = vmax.f32 %v1906_v14, 0.0 }
 0x3f3   : > { %v1967_v35 = vmax.f32 %v1919_v18, 0.0  ;;  %v2478_v33 = vpack.c.bf16 %v1999_v19, %v1998_v61  ;;  %v2006_v43 = vmin.f32 %v1958_v17, 1.0  ;;  %v1760_v37 = vmin.f32 %v1712_v20, 1.0 }
 0x3f4   : > { %v1961_v50 = vmax.f32 %v1913_v36, 0.0  ;;  %v2487_v45 = vpack.c.bf16 %v2012_v0, %v2012_v0  ;;  %v2002_v59 = vmin.f32 %v1954_v44, 1.0  ;;  %v1713_v27 = vmax.f32 %v3643_v34, 0.0  ;;  %v3708_v28 = vpop.f32.mrb[80].mxu1 }
 0x3f5   : > { %v2015_v26 = vmin.f32 %v1967_v35, 1.0  ;;  %2204 = vst [vmem:[%s3648_s6 + $0x18] sm:$0xff] %v2478_v33  ;;  %v2483_v5 = vpack.c.bf16 %v2006_v43, %v2006_v43  ;;  %v1810_v23 = vmul.f32 %v3608_v24, %v1760_v37  ;;  %v1732_v61 = vmax.f32 %v3645_v62, 0.0  ;;  %v3713_v21 = vpop.f32.mrb[81].mxu1 }
 0x3f6   : > { %v2009_v3 = vmin.f32 %v1961_v50, 1.0  ;;  %2213 = vst [vmem:[%s3648_s6 + $0x50] sm:$0xf] %v2487_v45  ;;  %v2480_v39 = vpack.c.bf16 %v2002_v59, %v2001_v16  ;;  %v1761_v15 = vmin.f32 %v1713_v27, 1.0  ;;  %v1715_v34 = vmax.f32 %v3652_v53, 0.0  ;;  %v3717_v14 = vpop.f32.mrb[82].mxu1 }
 0x3f7   : > { %v2489_v38 = vpack.c.bf16 %v2015_v26, %v2015_v26  ;;  %2209 = vst [vmem:[%s3648_s6 + $0x38] sm:$0xf] %v2483_v5  ;;  %v1858_v19 = vadd.f32 %v1810_v23, %v3450_v48  ;;  %v1780_v17 = vmin.f32 %v1732_v61, 1.0  ;;  %v1726_v36 = vmax.f32 %v3654_v51, 0.0  ;;  %v3722_v20 = vpop.f32.mrb[83].mxu1 }
 0x3f8   : > { %v2485_v18 = vpack.c.bf16 %v2009_v3, %v2009_v3  ;;  %2206 = vst [vmem:[%s3648_s6 + $0x24] sm:$0xff] %v2480_v39  ;;  %v1811_v62 = vmul.f32 %v3608_v24, %v1761_v15  ;;  %v1763_v0 = vmin.f32 %v1715_v34, 1.0  ;;  %v1716_v16 = vmax.f32 %v3658_v8, 0.0 }
 0x3f9   : > { %2215 = vst [vmem:[%s3648_s6 + $0x5c] sm:$0xf] %v2489_v38  ;;  %v1735_v53 = vmax.f32 %v3660_v58, 0.0  ;;  %v1908_v44 = vadd.f32 %v3610_v49, %v1858_v19  ;;  %v1830_v35 = vmul.f32 %v3608_v24, %v1780_v17  ;;  %v1774_v48 = vmin.f32 %v1726_v36, 1.0 }
 0x3fa   : > { %2211 = vst [vmem:[%s3648_s6 + $0x44] sm:$0xf] %v2485_v18  ;;  %v1729_v33 = vmax.f32 %v3664_v46, 0.0  ;;  %v1859_v51 = vadd.f32 %v1811_v62, %v3455_v56  ;;  %v1813_v43 = vmul.f32 %v3608_v24, %v1763_v0  ;;  %v1764_v50 = vmin.f32 %v1716_v16, 1.0 }
 0x3fb   : > { %v1783_v37 = vmin.f32 %v1735_v53, 1.0  ;;  %v1956_v45 = vmax.f32 %v1908_v44, 0.0  ;;  %v1878_v59 = vadd.f32 %v1830_v35, %v3458_v2  ;;  %v1824_v8 = vmul.f32 %v3608_v24, %v1774_v48 }
 0x3fc   : > { %v1777_v58 = vmin.f32 %v1729_v33, 1.0  ;;  %v1909_v26 = vadd.f32 %v3610_v49, %v1859_v51  ;;  %v1861_v27 = vadd.f32 %v1813_v43, %v3463_v30  ;;  %v1814_v5 = vmul.f32 %v3608_v24, %v1764_v50  ;;  %v3741_v3 = vpop.f32.mrb[84].mxu1 }
 0x3fd   : > { %v1833_v46 = vmul.f32 %v3608_v24, %v1783_v37  ;;  %v2004_v56 = vmin.f32 %v1956_v45, 1.0  ;;  %v1928_v23 = vadd.f32 %v3610_v49, %v1878_v59  ;;  %v1872_v61 = vadd.f32 %v1824_v8, %v3466_v60  ;;  %v3746_v39 = vpop.f32.mrb[85].mxu1 }
 0x3fe   : > { %v1827_v2 = vmul.f32 %v3608_v24, %v1777_v58  ;;  %v1957_v38 = vmax.f32 %v1909_v26, 0.0  ;;  %v1911_v15 = vadd.f32 %v3610_v49, %v1861_v27  ;;  %v1862_v30 = vadd.f32 %v1814_v5, %v3470_v40  ;;  %v3751_v18 = vpop.f32.mrb[86].mxu1 }
 0x3ff   : > { %v1881_v34 = vadd.f32 %v1833_v46, %v3473_v31  ;;  %v1976_v19 = vmax.f32 %v1928_v23, 0.0  ;;  %v1922_v17 = vadd.f32 %v3610_v49, %v1872_v61  ;;  %v1718_v60 = vmax.f32 %v3678_v9, 0.0  ;;  %v3756_v62 = vpop.f32.mrb[87].mxu1 }
 0x400   : > { %v1875_v36 = vadd.f32 %v1827_v2, %v3476_v29  ;;  %v2005_v0 = vmin.f32 %v1957_v38, 1.0  ;;  %v1959_v16 = vmax.f32 %v1911_v15, 0.0  ;;  %v1912_v53 = vadd.f32 %v3610_v49, %v1862_v30 }
 0x401   : > { %v1931_v40 = vadd.f32 %v3610_v49, %v1881_v34  ;;  %v2024_v44 = vmin.f32 %v1976_v19, 1.0  ;;  %v1970_v31 = vmax.f32 %v1922_v17, 0.0  ;;  %v1766_v48 = vmin.f32 %v1718_v60, 1.0 }
 0x402   : > { %v1925_v35 = vadd.f32 %v3610_v49, %v1875_v36  ;;  %v2482_v33 = vpack.c.bf16 %v2005_v0, %v2004_v56  ;;  %v2007_v51 = vmin.f32 %v1959_v16, 1.0  ;;  %v1960_v29 = vmax.f32 %v1912_v53, 0.0 }
 0x403   : > { %v1979_v43 = vmax.f32 %v1931_v40, 0.0  ;;  %v2495_v9 = vpack.c.bf16 %v2024_v44, %v2024_v44  ;;  %v2018_v50 = vmin.f32 %v1970_v31, 1.0  ;;  %v1816_v45 = vmul.f32 %v3608_v24, %v1766_v48 }
 0x404   : > { %v1973_v37 = vmax.f32 %v1925_v35, 0.0  ;;  %2208 = vst [vmem:[%s3648_s6 + $0x30] sm:$0xff] %v2482_v33  ;;  %v2008_v59 = vmin.f32 %v1960_v29, 1.0  ;;  %v1719_v58 = vmax.f32 %v3683_v10, 0.0  ;;  %v1744_v26 = vmax.f32 %v3685_v42, 0.0  ;;  %v3765_v27 = vpop.f32.mrb[88].mxu1 }
 0x405   : > { %v2027_v8 = vmin.f32 %v1979_v43, 1.0  ;;  %2221 = vst [vmem:[%s3648_s6 + $0x80] sm:$0xf] %v2495_v9  ;;  %v2491_v5 = vpack.c.bf16 %v2018_v50, %v2018_v50  ;;  %v1864_v56 = vadd.f32 %v1816_v45, %v3482_v57  ;;  %v1721_v23 = vmax.f32 %v3691_v1, 0.0  ;;  %v3770_v61 = vpop.f32.mrb[89].mxu1 }
 0x406   : > { %v2021_v46 = vmin.f32 %v1973_v37, 1.0  ;;  %v2484_v2 = vpack.c.bf16 %v2008_v59, %v2007_v51  ;;  %v1767_v15 = vmin.f32 %v1719_v58, 1.0  ;;  %v1792_v10 = vmin.f32 %v1744_v26, 1.0  ;;  %v3772_v30 = vpop.f32.mrb[90].mxu1 }
 0x407   : > { %v2497_v38 = vpack.c.bf16 %v2027_v8, %v2027_v8  ;;  %2217 = vst [vmem:[%s3648_s6 + $0x68] sm:$0xf] %v2491_v5  ;;  %v1914_v34 = vadd.f32 %v3610_v49, %v1864_v56  ;;  %v1769_v19 = vmin.f32 %v1721_v23, 1.0  ;;  %v1738_v17 = vmax.f32 %v3693_v22, 0.0  ;;  %v3777_v36 = vpop.f32.mrb[91].mxu1 }
 0x408   : > { %v2493_v42 = vpack.c.bf16 %v2021_v46, %v2021_v46  ;;  %2210 = vst [vmem:[%s3648_s6 + $0x3c] sm:$0xff] %v2484_v2  ;;  %v1817_v57 = vmul.f32 %v3608_v24, %v1767_v15  ;;  %v1842_v1 = vmul.f32 %v3608_v24, %v1792_v10  ;;  %v1722_v60 = vmax.f32 %v3697_v4, 0.0 }
 0x409   : > { %2223 = vst [vmem:[%s3648_s6 + $0x8c] sm:$0xf] %v2497_v38  ;;  %v1747_v0 = vmax.f32 %v3699_v41, 0.0  ;;  %v1962_v16 = vmax.f32 %v1914_v34, 0.0  ;;  %v1819_v53 = vmul.f32 %v3608_v24, %v1769_v19  ;;  %v1786_v40 = vmin.f32 %v1738_v17, 1.0 }
 0x40a   : > { %2219 = vst [vmem:[%s3648_s6 + $0x74] sm:$0xf] %v2493_v42  ;;  %v1741_v44 = vmax.f32 %v3703_v13, 0.0  ;;  %v1865_v22 = vadd.f32 %v1817_v57, %v3487_v63  ;;  %v1890_v31 = vadd.f32 %v1842_v1, %v3490_v52  ;;  %v1770_v35 = vmin.f32 %v1722_v60, 1.0 }
 0x40b   : > { %v1795_v48 = vmin.f32 %v1747_v0, 1.0  ;;  %v2010_v33 = vmin.f32 %v1962_v16, 1.0  ;;  %v1867_v51 = vadd.f32 %v1819_v53, %v3495_v11  ;;  %v1836_v4 = vmul.f32 %v3608_v24, %v1786_v40 }
 0x40c   : > { %v1789_v29 = vmin.f32 %v1741_v44, 1.0  ;;  %v1915_v41 = vadd.f32 %v3610_v49, %v1865_v22  ;;  %v1940_v43 = vadd.f32 %v3610_v49, %v1890_v31  ;;  %v1820_v9 = vmul.f32 %v3608_v24, %v1770_v35  ;;  %v3796_v50 = vpop.f32.mrb[92].mxu1 }
 0x40d   : > { %v1845_v13 = vmul.f32 %v3608_v24, %v1795_v48  ;;  %v1917_v63 = vadd.f32 %v3610_v49, %v1867_v51  ;;  %v1884_v52 = vadd.f32 %v1836_v4, %v3498_v6  ;;  %v1724_v11 = vmax.f32 %v3708_v28, 0.0  ;;  %v3802_v45 = vpop.f32.mrb[93].mxu1 }
 0x40e   : > { %v1839_v37 = vmul.f32 %v3608_v24, %v1789_v29  ;;  %v1963_v59 = vmax.f32 %v1915_v41, 0.0  ;;  %v1988_v8 = vmax.f32 %v1940_v43, 0.0  ;;  %v1868_v58 = vadd.f32 %v1820_v9, %v3504_v12  ;;  %v3806_v5 = vpop.f32.mrb[94].mxu1 }
 0x40f   : > { %v1893_v26 = vadd.f32 %v1845_v13, %v3507_v25  ;;  %v1965_v46 = vmax.f32 %v1917_v63, 0.0  ;;  %v1934_v56 = vadd.f32 %v3610_v49, %v1884_v52  ;;  %v1772_v6 = vmin.f32 %v1724_v11, 1.0  ;;  %v3810_v2 = vpop.f32.mrb[95].mxu1 }
 0x410   : > { %v1887_v23 = vadd.f32 %v1839_v37, %v3512_v54  ;;  %v2011_v38 = vmin.f32 %v1963_v59, 1.0  ;;  %v2036_v28 = vmin.f32 %v1988_v8, 1.0  ;;  %v1918_v15 = vadd.f32 %v3610_v49, %v1868_v58  ;;  %v4013_v8 = vld [vmem:[#allocation9_spill] sm:$0xff] }
 0x411   : > { %v1943_v12 = vadd.f32 %v3610_v49, %v1893_v26  ;;  %v2013_v10 = vmin.f32 %v1965_v46, 1.0  ;;  %v1982_v25 = vmax.f32 %v1934_v56, 0.0  ;;  %v1822_v34 = vmul.f32 %v3608_v24, %v1772_v6 }
 0x412   : > { %v1937_v42 = vadd.f32 %v3610_v49, %v1887_v23  ;;  %v2486_v19 = vpack.c.bf16 %v2011_v38, %v2010_v33  ;;  %v2503_v17 = vpack.c.bf16 %v2036_v28, %v2036_v28  ;;  %v1966_v54 = vmax.f32 %v1918_v15, 0.0 }
 0x413   : > { %v1991_v57 = vmax.f32 %v1943_v12, 0.0  ;;  %v2030_v1 = vmin.f32 %v1982_v25, 1.0  ;;  %v1870_v0 = vadd.f32 %v1822_v34, %v3522_v47  ;;  %v1725_v16 = vmax.f32 %v3713_v21, 0.0  ;;  %v4015_v12 = vld [vmem:[#allocation11_spill] sm:$0xff] }
 0x414   : > { %v1985_v60 = vmax.f32 %v1937_v42, 0.0  ;;  %2212 = vst [vmem:[%s3648_s6 + $0x48] sm:$0xff] %v2486_v19  ;;  %2229 = vst [vmem:[%s3648_s6 + $0xb0] sm:$0xf] %v2503_v17  ;;  %v2014_v53 = vmin.f32 %v1966_v54, 1.0  ;;  %v1727_v44 = vmax.f32 %v3717_v14, 0.0 }
 0x415   : > { %v2039_v40 = vmin.f32 %v1991_v57, 1.0  ;;  %v1728_v22 = vmax.f32 %v3722_v20, 0.0  ;;  %v2499_v31 = vpack.c.bf16 %v2030_v1, %v2030_v1  ;;  %v1920_v48 = vadd.f32 %v3610_v49, %v1870_v0  ;;  %v4016_v17 = vld [vmem:[#allocation12_spill] sm:$0xff]  ;;  %v4017_v57 = vld [vmem:[#allocation13_spill] sm:$0xff]  ;;  %v4018_v0 = vld [vmem:[#allocation14_spill] sm:$0xff] }
 0x416   : > { %v2033_v35 = vmin.f32 %v1985_v60, 1.0  ;;  %v1773_v33 = vmin.f32 %v1725_v16, 1.0  ;;  %v2488_v47 = vpack.c.bf16 %v2014_v53, %v2013_v10  ;;  %v1775_v4 = vmin.f32 %v1727_v44, 1.0 }
 0x417   : > { %v2505_v51 = vpack.c.bf16 %v2039_v40, %v2039_v40  ;;  %v1776_v21 = vmin.f32 %v1728_v22, 1.0  ;;  %2225 = vst [vmem:[%s3648_s6 + $0x98] sm:$0xf] %v2499_v31  ;;  %v1968_v41 = vmax.f32 %v1920_v48, 0.0  ;;  %v1730_v14 = vmax.f32 %v3741_v3, 0.0  ;;  %v4014_v3 = vld [vmem:[#allocation10_spill] sm:$0xff] }
 0x418   : > { %v2501_v29 = vpack.c.bf16 %v2033_v35, %v2033_v35  ;;  %v1823_v43 = vmul.f32 %v3608_v24, %v1773_v33  ;;  %2214 = vst [vmem:[%s3648_s6 + $0x54] sm:$0xff] %v2488_v47  ;;  %v1825_v20 = vmul.f32 %v3608_v24, %v1775_v4  ;;  %v1731_v13 = vmax.f32 %v3746_v39, 0.0  ;;  %v4019_v47 = vld [vmem:[#allocation15_spill] sm:$0xff] }
 0x419   : > { %2231 = vst [vmem:[%s3648_s6 + $0xbc] sm:$0xf] %v2505_v51  ;;  %v1826_v9 = vmul.f32 %v3608_v24, %v1776_v21  ;;  %v1733_v63 = vmax.f32 %v3751_v18, 0.0  ;;  %v2016_v52 = vmin.f32 %v1968_v41, 1.0  ;;  %v1778_v11 = vmin.f32 %v1730_v14, 1.0 }
 0x41a   : > { %2227 = vst [vmem:[%s3648_s6 + $0xa4] sm:$0xf] %v2501_v29  ;;  %v1871_v37 = vadd.f32 %v1823_v43, %v3528_v7  ;;  %v1734_v59 = vmax.f32 %v3756_v62, 0.0  ;;  %v1873_v58 = vadd.f32 %v1825_v20, %v4013_v8  ;;  %v1779_v46 = vmin.f32 %v1731_v13, 1.0 }
 0x41b   : > { %v1874_v26 = vadd.f32 %v1826_v9, %v4014_v3  ;;  %v1781_v56 = vmin.f32 %v1733_v63, 1.0  ;;  %v1828_v6 = vmul.f32 %v3608_v24, %v1778_v11  ;;  %v1736_v18 = vmax.f32 %v3765_v27, 0.0 }
 0x41c   : > { %v1921_v23 = vadd.f32 %v3610_v49, %v1871_v37  ;;  %v1782_v39 = vmin.f32 %v1734_v59, 1.0  ;;  %v1923_v38 = vadd.f32 %v3610_v49, %v1873_v58  ;;  %v1829_v28 = vmul.f32 %v3608_v24, %v1779_v46 }
 0x41d   : > { %v1924_v7 = vadd.f32 %v3610_v49, %v1874_v26  ;;  %v1831_v62 = vmul.f32 %v3608_v24, %v1781_v56  ;;  %v1876_v10 = vadd.f32 %v1828_v6, %v4015_v12  ;;  %v1784_v42 = vmin.f32 %v1736_v18, 1.0  ;;  %v4020_v6 = vld [vmem:[#allocation16_spill] sm:$0xff] }
 0x41e   : > { %v1969_v15 = vmax.f32 %v1921_v23, 0.0  ;;  %v1832_v25 = vmul.f32 %v3608_v24, %v1782_v39  ;;  %v1971_v34 = vmax.f32 %v1923_v38, 0.0  ;;  %v1877_v54 = vadd.f32 %v1829_v28, %v4016_v17 }
 0x41f   : > { %v1972_v19 = vmax.f32 %v1924_v7, 0.0  ;;  %v1879_v27 = vadd.f32 %v1831_v62, %v4017_v57  ;;  %v1926_v60 = vadd.f32 %v3610_v49, %v1876_v10  ;;  %v1834_v53 = vmul.f32 %v3608_v24, %v1784_v42 }
 0x420   : > { %v2017_v1 = vmin.f32 %v1969_v15, 1.0  ;;  %v1880_v16 = vadd.f32 %v1832_v25, %v4018_v0  ;;  %v2019_v40 = vmin.f32 %v1971_v34, 1.0  ;;  %v1927_v22 = vadd.f32 %v3610_v49, %v1877_v54  ;;  %v4022_v54 = vld [vmem:[#allocation18_spill] sm:$0xff] }
 0x421   : > { %v2020_v44 = vmin.f32 %v1972_v19, 1.0  ;;  %v1929_v31 = vadd.f32 %v3610_v49, %v1879_v27  ;;  %v1974_v48 = vmax.f32 %v1926_v60, 0.0  ;;  %v1882_v51 = vadd.f32 %v1834_v53, %v4019_v47 }
 0x422   : > { %v2490_v35 = vpack.c.bf16 %v2017_v1, %v2016_v52  ;;  %v1930_v33 = vadd.f32 %v3610_v49, %v1880_v16  ;;  %v1975_v21 = vmax.f32 %v1927_v22, 0.0  ;;  %v1737_v41 = vmax.f32 %v3770_v61, 0.0  ;;  %v4023_v16 = vld [vmem:[#allocation19_spill] sm:$0xff]  ;;  %v4024_v22 = vld [vmem:[#allocation20_spill] sm:$0xff] }
 0x423   : > { %v2492_v4 = vpack.c.bf16 %v2020_v44, %v2019_v40  ;;  %v1977_v29 = vmax.f32 %v1929_v31, 0.0  ;;  %v2022_v43 = vmin.f32 %v1974_v48, 1.0  ;;  %v1932_v20 = vadd.f32 %v3610_v49, %v1882_v51 }
 0x424   : > { %2216 = vst [vmem:[%s3648_s6 + $0x60] sm:$0xff] %v2490_v35  ;;  %v1978_v14 = vmax.f32 %v1930_v33, 0.0  ;;  %v1739_v9 = vmax.f32 %v3772_v30, 0.0  ;;  %v2023_v13 = vmin.f32 %v1975_v21, 1.0  ;;  %v1785_v52 = vmin.f32 %v1737_v41, 1.0 }
 0x425   : > { %2218 = vst [vmem:[%s3648_s6 + $0x6c] sm:$0xff] %v2492_v4  ;;  %v2025_v63 = vmin.f32 %v1977_v29, 1.0  ;;  %v1740_v37 = vmax.f32 %v3777_v36, 0.0  ;;  %v1742_v8 = vmax.f32 %v3796_v50, 0.0  ;;  %v1743_v26 = vmax.f32 %v3802_v45, 0.0  ;;  %v4021_v50 = vld [vmem:[#allocation17_spill] sm:$0xff] }
 0x426   : > { %v2026_v11 = vmin.f32 %v1978_v14, 1.0  ;;  %v1787_v59 = vmin.f32 %v1739_v9, 1.0  ;;  %v2494_v61 = vpack.c.bf16 %v2023_v13, %v2022_v43  ;;  %v1835_v58 = vmul.f32 %v3608_v24, %v1785_v52 }
 0x427   : > { %v1788_v3 = vmin.f32 %v1740_v37, 1.0  ;;  %v1980_v30 = vmax.f32 %v1932_v20, 0.0  ;;  %v1790_v23 = vmin.f32 %v1742_v8, 1.0  ;;  %v1791_v18 = vmin.f32 %v1743_v26, 1.0 }
 0x428   : > { %v2496_v46 = vpack.c.bf16 %v2026_v11, %v2025_v63  ;;  %v1837_v56 = vmul.f32 %v3608_v24, %v1787_v59  ;;  %2220 = vst [vmem:[%s3648_s6 + $0x78] sm:$0xff] %v2494_v61  ;;  %v1883_v39 = vadd.f32 %v1835_v58, %v4020_v6  ;;  %v1745_v38 = vmax.f32 %v3806_v5, 0.0 }
 0x429   : > { %v1838_v36 = vmul.f32 %v3608_v24, %v1788_v3  ;;  %v1840_v28 = vmul.f32 %v3608_v24, %v1790_v23  ;;  %v1746_v45 = vmax.f32 %v3810_v2, 0.0  ;;  %v1841_v12 = vmul.f32 %v3608_v24, %v1791_v18 }
 0x42a   : > { %2222 = vst [vmem:[%s3648_s6 + $0x84] sm:$0xff] %v2496_v46  ;;  %v1885_v7 = vadd.f32 %v1837_v56, %v4021_v50  ;;  %v1933_v62 = vadd.f32 %v3610_v49, %v1883_v39  ;;  %v1793_v10 = vmin.f32 %v1745_v38, 1.0  ;;  %v2028_v25 = vmin.f32 %v1980_v30, 1.0 }
 0x42b   : > { %v1886_v15 = vadd.f32 %v1838_v36, %v3578_v32  ;;  %v1888_v5 = vadd.f32 %v1840_v28, %v3583_v55  ;;  %v1794_v34 = vmin.f32 %v1746_v45, 1.0  ;;  %v1889_v57 = vadd.f32 %v1841_v12, %v4022_v54 }
 0x42c   : > { %v1935_v42 = vadd.f32 %v3610_v49, %v1885_v7  ;;  %v1981_v19 = vmax.f32 %v1933_v62, 0.0  ;;  %v1843_v2 = vmul.f32 %v3608_v24, %v1793_v10 }
 0x42d   : > { %v1936_v17 = vadd.f32 %v3610_v49, %v1886_v15  ;;  %v1938_v32 = vadd.f32 %v3610_v49, %v1888_v5  ;;  %v1844_v1 = vmul.f32 %v3608_v24, %v1794_v34  ;;  %v1939_v55 = vadd.f32 %v3610_v49, %v1889_v57 }
 0x42e   : > { %v1983_v27 = vmax.f32 %v1935_v42, 0.0  ;;  %v2029_v60 = vmin.f32 %v1981_v19, 1.0  ;;  %v1891_v53 = vadd.f32 %v1843_v2, %v4023_v16 }
 0x42f   : > { %v1984_v0 = vmax.f32 %v1936_v17, 0.0  ;;  %v1986_v44 = vmax.f32 %v1938_v32, 0.0  ;;  %v1892_v31 = vadd.f32 %v1844_v1, %v4024_v22  ;;  %v1987_v33 = vmax.f32 %v1939_v55, 0.0 }
 0x430   : > { %v2031_v40 = vmin.f32 %v1983_v27, 1.0  ;;  %v2498_v35 = vpack.c.bf16 %v2029_v60, %v2028_v25  ;;  %v1941_v24 = vadd.f32 %v3610_v49, %v1891_v53 }
 0x431   : > { %v2032_v48 = vmin.f32 %v1984_v0, 1.0  ;;  %v2034_v47 = vmin.f32 %v1986_v44, 1.0  ;;  %v1942_v51 = vadd.f32 %v3610_v49, %v1892_v31  ;;  %v2035_v21 = vmin.f32 %v1987_v33, 1.0 }
 0x432   : > { %2224 = vst [vmem:[%s3648_s6 + $0x90] sm:$0xff] %v2498_v35  ;;  %v1989_v29 = vmax.f32 %v1941_v24, 0.0 }
 0x433   : > { %v2500_v4 = vpack.c.bf16 %v2032_v48, %v2031_v40  ;;  %v1990_v41 = vmax.f32 %v1942_v51, 0.0  ;;  %v2502_v43 = vpack.c.bf16 %v2035_v21, %v2034_v47 }
 0x434   : > { %v2037_v14 = vmin.f32 %v1989_v29, 1.0 }
 0x435   : > { %2226 = vst [vmem:[%s3648_s6 + $0x9c] sm:$0xff] %v2500_v4  ;;  %v2038_v20 = vmin.f32 %v1990_v41, 1.0  ;;  %2228 = vst [vmem:[%s3648_s6 + $0xa8] sm:$0xff] %v2502_v43 }
 0x437   : > { %v2504_v49 = vpack.c.bf16 %v2038_v20, %v2037_v14 }
 0x439   : > { %2230 = vst [vmem:[%s3648_s6 + $0xb4] sm:$0xff] %v2504_v49 }
 0x43a   : > { %2787 = shalt.err (!%p2784_p12)
}
 0x43b   : > { %s2788_s23 = scalar_lea.hbm %s3899_s17, 3072  ;;  %s2792_s7 = scalar_lea.hbm %s3961_s5, 18432 }
 0x43c   : > { %p2789_p0 = scmp.ne.s32.totalorder %s3899_s17, %s2788_s23  ;;  %p2793_p3 = scmp.lt.u32.totalorder %s3899_s17, %s3961_s5 }
 0x43d   : > { %p2794_p4 = scmp.lt.u32.totalorder %s2792_s7, %s2788_s23  ;;  %p2796_p6 = scmp.lt.u32.totalorder %s2788_s23, %s3899_s17 }
 0x43e   : > { %p2790_p1 = pnand %p2789_p0, %p2964_p8 }
 0x43f   : > { %p2795_p5 = por %p2794_p4, %p2793_p3 }
 0x440   : > { %p2791_p2 = pneg %p2790_p1 }
 0x441   : > { %p2797_p7 = por %p2796_p6, %p2795_p5 }
 0x443   : > { %p2798_p9 = pnand %p2797_p7, %p2791_p2 }
 0x445   : > { %2801 = shalt.err (!%p2798_p9)
}
 0x446   : > { %s2875_s13 = smov 192   ;;  %s2876_s14 = smov 12  }
 0x447   : > { %2672 = dma.vmem_to_hbm [thread:$0]  (%p2964_p8), %s3894_s27, 3072, %s3899_s17, %s3904_s18, %s2875_s13, %s2875_s13, %s2876_s14  }
 0x448 PF: > { %p2678_p10 = scmp.ge.s32.totalorder %s2870_s30, 2  ;;  %s2264_s15 = sand.u32 1, %s2842_s0  }
 0x449   : > { %s2265_s19 = scalar_lea.sflag [#allocation6], %s2264_s15 }
 0x44a   : > { %p2675_p11 = pnand %p2678_p10, %p2973_p13 }
 0x44c   : > { %2837 = dma.done.wait (!%p2675_p11), %s2265_s19, 3072  }
 0x44d   : > { %2839 = vsyncadd (!%p2675_p11), %s2265_s19, 4294964224  ;;  %s25_s30 = sadd.s32 1, %s2870_s30   ;;  %s4025_s0 = smov %s2846_s25 }
 0x44e   : > { %p22_p12 = scmp.ge.s32.totalorder %s25_s30, 8   ;;  %s4026_s25 = smov %s2850_s1 }
 0x44f   : > { %s4027_s1 = smov %s2982_s16  ;;  %s4028_s26 = smov %s2862_s28 }
 0x450   : > { %s4029_s27 = smov %s2866_s29  ;;  %s4030_s28 = smov %s4033_s8 }
 0x451   : > { %s4031_s29 = smov %s4037_s9  ;;  %24 = sbr.rel (!%p22_p12) target bundleno = 20 (0x14), region = 72 }
 0x458   :  { %2270 = vsyncpa [#allocation6], 1 }
 0x459   :  { %2272 = vsyncpa [#allocation6 + $0x1], 1 }

</bundles_post_ra>
